<compile_context>
chip_gen: v7x
topology: tpu7x:2x2x1
jax: 0.10.0
libtpu: 0.0.40
codegen_flags: <defaults>
</compile_context>

<pallas_src>
import numpy as np

import jax
import jax.numpy as jnp
from jax.experimental import pallas as pl
from jax.experimental.pallas import tpu as pltpu


def _flame_texture_kernel(params_ref, basis_ref, mean_ref, out_ref):
    # params_ref: (N, P) bf16 (resident); basis_ref: (P, TM) bf16 or int8;
    # mean_ref: (1, TM) f32; out_ref: (N, TM) out_dtype.
    basis = basis_ref[...]
    if basis.dtype != jnp.bfloat16:
        # int8 basis path: exact int8 -> bf16 cast (the per-component dequant
        # scale is folded into the tiny params matrix in the wrapper).  VPU
        # has huge slack here; the win is the halved HBM read of the basis.
        basis = basis.astype(jnp.bfloat16)
    diff = jnp.dot(
        params_ref[...], basis, preferred_element_type=jnp.float32
    )  # MXU, f32 accumulate
    # Fused epilogue: mean add + cast to downstream dtype in a single pass.
    out_ref[...] = (mean_ref[...] + diff).astype(out_ref.dtype)


def prepare_flame_texture(mean, basis, num_params, *, quantize_int8=False):
    """One-time (model-init) preparation of the constant FLAME texture space.

    mean:  (C, H, W) float
    basis: (C, H, W, K) float, K >= num_params

    Returns (mean_flat (1, M) f32, basis_flat (P, M) bf16|int8,
             basis_scale (1, P) f32 or None).
    Cache the result: the slice+transpose+cast of the ~630 MB basis must not
    be paid on every forward.
    """
    C, H, W, K = basis.shape
    P = int(num_params)
    assert P <= K
    M = C * H * W
    basis_flat = basis[..., :P].reshape(M, P).T.astype(jnp.float32)  # (P, M)
    mean_flat = mean.reshape(1, M).astype(jnp.float32)               # (1, M)
    if quantize_int8:
        # Per-component symmetric quantization; scale folded into params at
        # call time so the kernel never touches scales per tile.
        scale = jnp.max(jnp.abs(basis_flat), axis=1, keepdims=True) / 127.0
        scale = jnp.maximum(scale, jnp.finfo(jnp.float32).tiny)
        basis_q = jnp.clip(jnp.round(basis_flat / scale), -127.0, 127.0)
        return mean_flat, basis_q.astype(jnp.int8), scale.reshape(1, P)
        # TODO(synk): on v7x an fp8 (e4m3) basis path is the native narrow
        # MXU dtype; int8->bf16 cast above works everywhere, so keep it.
    return mean_flat, basis_flat.astype(jnp.bfloat16), None


_TILE_M_CANDIDATES = (65536, 49152, 32768, 24576, 16384, 8192)


def _select_tiling(P, N, basis_itemsize, out_itemsize):
    """Pick (tile_m, vmem_limit_bytes) per TPU generation.

    v5e/v6e (128 MiB VMEM): limit 96 MiB, tile_m up to 65536.
    v7x (64 MiB VMEM) / unknown: limit 48 MiB, tile_m ~32768.
    """
    try:
        info = pltpu.get_tpu_info()
        vmem_cap = int(getattr(info, "vmem_capacity_bytes", 0) or 0)
    except Exception:
        vmem_cap = 0
    if vmem_cap >= 128 * 1024 * 1024:
        vmem_limit = 96 * 1024 * 1024
    else:
        vmem_limit = 48 * 1024 * 1024
    budget = int(vmem_limit * 0.85)  # headroom for compiler scratch

    p_pad = -(-P // 32) * 32  # conservative sublane padding for bf16/int8
    n_pad = -(-N // 8) * 8

    def vmem_usage(tm):
        basis = 2 * p_pad * tm * basis_itemsize   # double-buffered basis tile
        out = 2 * n_pad * tm * out_itemsize       # double-buffered output
        mean = 2 * 8 * tm * 4                     # double-buffered f32 mean
        return basis + out + mean

    tile_m = _TILE_M_CANDIDATES[-1]
    for cand in _TILE_M_CANDIDATES:
        if vmem_usage(cand) <= budget:
            tile_m = cand
            break
    return tile_m, vmem_limit


def flame_texture_forward(texture_params, mean_flat, basis_flat, spatial_shape,
                          *, basis_scale=None, tile_m=None,
                          out_dtype=jnp.float32):
    """texture_params: (N, P).  mean_flat: (1, M) f32, basis_flat: (P, M)
    bf16 or int8 (with basis_scale (1, P)) from `prepare_flame_texture`.
    spatial_shape = (C, H, W) with C*H*W == M.
    Returns (N, C, H, W) in out_dtype (mean + differences, unclamped)."""
    N, P = texture_params.shape
    Pb, M = basis_flat.shape
    C, H, W = spatial_shape
    assert Pb == P
    assert mean_flat.shape == (1, M)
    assert C * H * W == M

    auto_tile_m, vmem_limit = _select_tiling(
        P, N, basis_flat.dtype.itemsize, np.dtype(out_dtype).itemsize)
    if tile_m is None:
        tile_m = auto_tile_m
    # Pixel axis M stays on the lane (last) dim.  A full-axis tile is exempt
    # from the 128-lane constraint; partial tiles must be multiples of 128.
    tile_m = min(tile_m, M)
    assert tile_m == M or tile_m % 128 == 0, (
        f"tile_m={tile_m} must equal M={M} or be a multiple of 128")

    params = texture_params.astype(jnp.float32)
    if basis_scale is not None:
        # Fold int8 dequant scales into the tiny (N, P) params matrix.
        params = params * basis_scale
    params = params.astype(jnp.bfloat16)

    grid = (pl.cdiv(M, tile_m),)  # partial final tile handled by Pallas:
                                  # OOB reads unspecified, OOB writes discarded
                                  # (padded columns never reduced or reused).

    out_flat = pl.pallas_call(
        _flame_texture_kernel,
        out_shape=jax.ShapeDtypeStruct((N, M), out_dtype),
        grid_spec=pltpu.PrefetchScalarGridSpec(
            num_scalar_prefetch=0,
            grid=grid,
            in_specs=[
                pl.BlockSpec((N, P), lambda i: (0, 0)),        # params (resident)
                pl.BlockSpec((P, tile_m), lambda i: (0, i)),   # basis tile
                pl.BlockSpec((1, tile_m), lambda i: (0, i)),   # f32 mean tile
            ],
            out_specs=pl.BlockSpec((N, tile_m), lambda i: (0, i)),  # lane-dense
        ),
        compiler_params=pltpu.CompilerParams(
            # TODO(synk): on v7x verify in xprof that both TensorCores stream
            # the basis; if only one TC is active switch this axis to
            # pltpu.CORE_PARALLEL (bandwidth-bound -> up to ~2x).
            dimension_semantics=("parallel",),
            vmem_limit_bytes=vmem_limit,
        ),
    )(params, basis_flat, mean_flat)

    return out_flat.reshape(N, C, H, W)


if __name__ == "__main__":
    # Small, deterministic synthetic "FLAME texture space" (real one is
    # C=3, H=W=512, K=200 — too big for a smoke test).
    C, H, W = 3, 64, 64
    K = 48        # number of stored basis components
    P = 32        # number of components actually used (<= K)
    N = 2         # batch

    key = jax.random.PRNGKey(0)
    k_mean, k_basis, k_params = jax.random.split(key, 3)

    # mean in [-1, 1] like (pixel / 127.5 - 1), basis scaled like (dir / 127.5)
    mean = jax.random.uniform(k_mean, (C, H, W), jnp.float32, -1.0, 1.0)
    basis = jax.random.normal(k_basis, (C, H, W, K), jnp.float32) / 127.5
    texture_params = jax.random.normal(k_params, (N, P), jnp.float32)

    # Unquantized f32 reference (matches the PyTorch module's math).
    ref_f32 = mean[None] + jnp.einsum(
        "chwi,ni->nchw", basis[..., :P], texture_params,
        precision=jax.lax.Precision.HIGHEST)

    # ---- default bf16 basis path ----
    mean_flat, basis_flat, _ = prepare_flame_texture(mean, basis, P)
    out = flame_texture_forward(texture_params, mean_flat, basis_flat, (C, H, W))
    out = jax.block_until_ready(out)
    assert out.shape == (N, C, H, W)

    # Exact-semantics reference: same bf16 quantization of basis/params,
    # f32 accumulation — should match the kernel to a few ULPs.
    basis_q = basis[..., :P].astype(jnp.bfloat16).astype(jnp.float32)
    params_q = texture_params.astype(jnp.bfloat16).astype(jnp.float32)
    ref_q = mean[None] + jnp.einsum(
        "chwi,ni->nchw", basis_q, params_q,
        precision=jax.lax.Precision.HIGHEST)
    assert jnp.allclose(out, ref_q, atol=1e-4, rtol=1e-4)

    # Loose check against the unquantized f32 reference (bf16 basis storage
    # introduces ~0.4% relative error on the differences term only).
    assert jnp.allclose(out, ref_f32, atol=5e-3, rtol=5e-2)

    # ---- optional int8 basis path (halves basis HBM traffic) ----
    mean_flat8, basis_i8, scale8 = prepare_flame_texture(
        mean, basis, P, quantize_int8=True)
    out_i8 = flame_texture_forward(texture_params, mean_flat8, basis_i8,
                                   (C, H, W), basis_scale=scale8)
    out_i8 = jax.block_until_ready(out_i8)
    assert out_i8.shape == (N, C, H, W)
    assert jnp.allclose(out_i8, ref_f32, atol=2e-2, rtol=1e-1)

    print("KERNEL_OK")
</pallas_src>

<mosaic_0001>
module attributes {stable_mosaic.version = 11 : i64} {
  func.func @_flame_texture_kernel(%arg0: i32, %arg1: memref<2x32xbf16, #tpu.memory_space<vmem>>, %arg2: memref<32x12288xbf16, #tpu.memory_space<vmem>>, %arg3: memref<1x12288xf32, #tpu.memory_space<vmem>>, %arg4: memref<2x12288xf32, #tpu.memory_space<vmem>>) attributes {dimension_semantics = [#tpu.dimension_semantics<parallel>], iteration_bounds = array<i64: 1>, scalar_prefetch = 0 : i64, scratch_operands = 0 : i64, tpu.core_type = #tpu.core_type<tc>, window_params = [{pipeline_mode = #tpu.pipeline_mode<synchronous>, transform_indices = @transform_0, window_bounds = array<i64: 2, 32>}, {transform_indices = @transform_1, window_bounds = array<i64: 32, 12288>}, {transform_indices = @transform_2, window_bounds = array<i64: 1, 12288>}, {transform_indices = @transform_3, window_bounds = array<i64: 2, 12288>}]} {
    %c0 = arith.constant 0 : index
    %c0_0 = arith.constant 0 : index
    %0 = vector.load %arg2[%c0, %c0_0] : memref<32x12288xbf16, #tpu.memory_space<vmem>>, vector<32x12288xbf16>
    %c0_1 = arith.constant 0 : index
    %c0_2 = arith.constant 0 : index
    %1 = vector.load %arg1[%c0_1, %c0_2] : memref<2x32xbf16, #tpu.memory_space<vmem>>, vector<2x32xbf16>
    %cst = arith.constant dense<0.000000e+00> : vector<2x12288xf32>
    %2 = tpu.matmul %1, %0, %cst {dimension_numbers = #tpu.dot_dimension_numbers<[1], [0], [0], [1], [0, 0, 1, 1], [], []>} : vector<2x32xbf16>, vector<32x12288xbf16>, vector<2x12288xf32> -> vector<2x12288xf32>
    %c0_3 = arith.constant 0 : index
    %c0_4 = arith.constant 0 : index
    %3 = vector.load %arg3[%c0_3, %c0_4] : memref<1x12288xf32, #tpu.memory_space<vmem>>, vector<1x12288xf32>
    %4 = vector.broadcast %3 : vector<1x12288xf32> to vector<2x12288xf32>
    %5 = arith.addf %4, %2 : vector<2x12288xf32>
    %c0_5 = arith.constant 0 : index
    %c0_6 = arith.constant 0 : index
    %6 = vector.load %arg4[%c0_5, %c0_6] : memref<2x12288xf32, #tpu.memory_space<vmem>>, vector<2x12288xf32>
    tpu.vector_store %arg4[%c0_5, %c0_6], %5 {strides = array<i32>} : memref<2x12288xf32, #tpu.memory_space<vmem>>, vector<2x12288xf32>,
    return
  }
  func.func @transform_0(%arg0: i32) -> (i32, i32) {
    %c0_i32 = arith.constant 0 : i32
    %c0_i32_0 = arith.constant 0 : i32
    %c0_i32_1 = arith.constant 0 : i32
    return %c0_i32, %c0_i32_0 : i32, i32
  }
  func.func @transform_1(%arg0: i32) -> (i32, i32) {
    %c0_i32 = arith.constant 0 : i32
    %c0_i32_0 = arith.constant 0 : i32
    return %c0_i32, %arg0 : i32, i32
  }
  func.func @transform_2(%arg0: i32) -> (i32, i32) {
    %c0_i32 = arith.constant 0 : i32
    %c0_i32_0 = arith.constant 0 : i32
    return %c0_i32, %arg0 : i32, i32
  }
  func.func @transform_3(%arg0: i32) -> (i32, i32) {
    %c0_i32 = arith.constant 0 : i32
    %c0_i32_0 = arith.constant 0 : i32
    return %c0_i32, %arg0 : i32, i32
  }
}

</mosaic_0001>

<bundles_post_ra>
// kernel: tpu_custom_call.1
= control target key start
LH: loop header
LB: loop body
LE: loop exit
PB: predicated region body
PF: predicated region fallthrough
CT: control target
= control target key end

     0   :  { %8 = vsyncpa [#allocation3], 0  ;;  %s5075_s0 = inlined_call_operand.hbm [shape: bf16[2,32], index: 0, kind: input, shape index: {}]   ;;  %s5076_s1 = inlined_call_operand.hbm [shape: bf16[32,12288], index: 1, kind: input, shape index: {}]   ;;  %s5077_s2 = inlined_call_operand.hbm [shape: f32[1,12288], index: 2, kind: input, shape index: {}]   ;;  %s5078_s3 = inlined_call_operand.hbm [shape: f32[2,12288], index: 3, kind: output, shape index: {}]  }
   0x1   :  { %9 = vsyncpa [#allocation6], 0 }
   0x2   :  { %10 = vsyncpa [#allocation4], 0  ;;  %s4689_s12 = smov [#allocation5]   ;;  %s4595_s16 = scalar_lea.hbm %s5076_s1, 24576 }
   0x3   :  { %s26_s13 = sshll.u32 %s4689_s12, 4  ;;  %p4596_p0 = scmp.ne.s32.totalorder %s5076_s1, %s4595_s16  ;;  %s27_s13 = int_to_ptr.vmem [resolvable:$true] %s26_s13 }
   0x4   :  { %p4599_p1 = scmp.lt.u32.totalorder %s4595_s16, %s5076_s1 }
   0x6   :  { %p4601_p2 = pnand %p4599_p1, %p4596_p0 }
   0x8   :  { %4604 = shalt.err (!%p4601_p2)
}
   0x9   :  { %s4605_s21 = scalar_lea.vmem %s27_s13, 24576  ;;  %p4610_p4 = scmp.lt.s32.totalorder %s27_s13, %s27_s13 }
   0xa   :  { %p4606_p3 = scmp.ne.s32.totalorder %s27_s13, %s4605_s21  ;;  %p4611_p5 = scmp.lt.s32.totalorder %s4605_s21, %s4605_s21 }
   0xc   :  { %p4612_p6 = por %p4611_p5, %p4610_p4 }
   0xe   :  { %p4613_p7 = pnand %p4612_p6, %p4606_p3 }
  0x10   :  { %4616 = shalt.err (!%p4613_p7)
}
  0x11   :  { %s4690_s22 = smov 6144   ;;  %s4691_s23 = smov 384  }
  0x12   :  { %32 = dma.hbm_to_vmem [thread:$0]  %s5076_s1, 24576, %s27_s13, [#allocation6], %s4690_s22, %s4690_s22, %s4691_s23  }
  0x13   :  { %s4692_s26 = smov [#allocation2]   ;;  %s4693_s28 = smov [#allocation7]  }
  0x14   :  { %s17_s27 = sshll.u32 %s4692_s26, 4  ;;  %s39_s29 = sshll.u32 %s4693_s28, 4  ;;  %s18_s27 = int_to_ptr.vmem [resolvable:$true] %s17_s27  ;;  %s40_s29 = int_to_ptr.vmem [resolvable:$true] %s39_s29 }
  0x15   :  { %s4617_s5 = scalar_lea.hbm %s5075_s0, 16 }
  0x16   :  { %p4618_p8 = scmp.ne.s32.totalorder %s5075_s0, %s4617_s5  ;;  %p4621_p9 = scmp.lt.u32.totalorder %s4617_s5, %s5075_s0 }
  0x18   :  { %p4623_p10 = pnand %p4621_p9, %p4618_p8 }
  0x1a   :  { %4626 = shalt.err (!%p4623_p10)
}
  0x1b   :  { %s4627_s1 = scalar_lea.vmem %s18_s27, 16  ;;  %s4631_s10 = scalar_lea.vmem %s18_s27, 32 }
  0x1c   :  { %p4628_p11 = scmp.ne.s32.totalorder %s18_s27, %s4627_s1  ;;  %p4632_p12 = scmp.lt.s32.totalorder %s18_s27, %s18_s27 }
  0x1d   :  { %p4633_p13 = scmp.lt.s32.totalorder %s4631_s10, %s4627_s1 }
  0x1f   :  { %p4634_p0 = por %p4633_p13, %p4632_p12 }
  0x21   :  { %p4635_p1 = pnand %p4634_p0, %p4628_p11 }
  0x23   :  { %4638 = shalt.err (!%p4635_p1)
}
  0x24   :  { %20 = dma.hbm_to_vmem [thread:$0]  %s5075_s0, 16, %s18_s27, [#allocation3]  }
  0x25   :  { %s4639_s15 = scalar_lea.hbm %s5077_s2, 1536 }
  0x26   :  { %p4640_p2 = scmp.ne.s32.totalorder %s5077_s2, %s4639_s15  ;;  %p4643_p3 = scmp.lt.u32.totalorder %s4639_s15, %s5077_s2 }
  0x28   :  { %p4645_p4 = pnand %p4643_p3, %p4640_p2 }
  0x2a   :  { %4648 = shalt.err (!%p4645_p4)
}
  0x2b   :  { %s4649_s20 = scalar_lea.vmem %s40_s29, 1536  ;;  %p4654_p6 = scmp.lt.s32.totalorder %s40_s29, %s40_s29 }
  0x2c   :  { %p4650_p5 = scmp.ne.s32.totalorder %s40_s29, %s4649_s20  ;;  %p4655_p7 = scmp.lt.s32.totalorder %s4649_s20, %s4649_s20 }
  0x2e   :  { %p4656_p8 = por %p4655_p7, %p4654_p6 }
  0x30   :  { %p4657_p9 = pnand %p4656_p8, %p4650_p5 }
  0x32   :  { %4660 = shalt.err (!%p4657_p9)
}
  0x33   :  { %42 = dma.hbm_to_vmem [thread:$0]  %s5077_s2, 1536, %s40_s29, [#allocation6]  }
  0x34   :  { %4683 = dma.done.wait [#allocation3], 16  }
  0x35   :  { %4684 = vsyncadd [#allocation3], 4294967280 }
  0x36   :  { %4685 = dma.done.wait [#allocation6], 26112  }
  0x37   :  { %4686 = vsyncadd [#allocation6], 4294941184  ;;  %v4694_v0 = vmov 0   ;;  %v53_v1 = vld [vmem:[#allocation5] sm:$0xff]  ;;  %v54_v3 = vld [vmem:[#allocation5 + $0x8] sm:$0xff]  ;;  %vm1206_vm0 = vcmask 261120  }
  0x38   :  { %1242 = vmatprep.mubr.bf16.mxu0 %v4694_v0  ;;  %1283 = vmatprep.mubr.bf16.mxu1 %v4694_v0  ;;  %v101_v2 = vld [vmem:[#allocation5 + $0x180] sm:$0xff]  ;;  %v102_v5 = vld [vmem:[#allocation5 + $0x188] sm:$0xff]  ;;  %v55_v15 = vld [vmem:[#allocation5 + $0x10] sm:$0xff]  ;;  %s4696_s2 = smov [#allocation8]  }
  0x39   :  { %v4347_v4 = vcombine.high %v53_v1, %v101_v2  ;;  %v4346_v6 = vcombine.low %v53_v1, %v101_v2  ;;  %v149_v7 = vld [vmem:[#allocation5 + $0x300] sm:$0xff]  ;;  %v4349_v9 = vcombine.high %v54_v3, %v102_v5  ;;  %v4348_v10 = vcombine.low %v54_v3, %v102_v5  ;;  %v150_v12 = vld [vmem:[#allocation5 + $0x308] sm:$0xff]  ;;  %v103_v16 = vld [vmem:[#allocation5 + $0x190] sm:$0xff]  ;;  %s4336_s22 = sshll.u32 %s4696_s2, 4  ;;  %s4337_s22 = int_to_ptr.vmem [resolvable:$true] %s4336_s22 }
  0x3a   :  { %v197_v8 = vld [vmem:[#allocation5 + $0x480] sm:$0xff]  ;;  %v198_v13 = vld [vmem:[#allocation5 + $0x488] sm:$0xff]  ;;  %v56_v17 = vld [vmem:[#allocation5 + $0x18] sm:$0xff]  ;;  %v4351_v21 = vcombine.high %v55_v15, %v103_v16  ;;  %v4350_v28 = vcombine.low %v55_v15, %v103_v16  ;;  %s4661_s23 = scalar_lea.vmem %s4337_s22, 3072  ;;  %p4666_p11 = scmp.lt.s32.totalorder %s4337_s22, %s4337_s22 }
  0x3b   :  { %v4443_v11 = vcombine.high %v149_v7, %v197_v8  ;;  %1210 = vmatprep.subr.bf16.mxu0 %v4347_v4  ;;  %v4445_v14 = vcombine.high %v150_v12, %v198_v13  ;;  %1251 = vmatprep.subr.bf16.mxu1 %v4349_v9  ;;  %v4442_v18 = vcombine.low %v149_v7, %v197_v8  ;;  %v104_v19 = vld [vmem:[#allocation5 + $0x198] sm:$0xff]  ;;  %v151_v23 = vld [vmem:[#allocation5 + $0x310] sm:$0xff]  ;;  %v57_v32 = vld [vmem:[#allocation5 + $0x20] sm:$0xff]  ;;  %p4662_p10 = scmp.ne.s32.totalorder %s4337_s22, %s4661_s23  ;;  %p4667_p12 = scmp.lt.s32.totalorder %s4661_s23, %s4661_s23 }
  0x3c   :  { %1211 = vmatpush1.bf16.msra.mxu0 %v4346_v6  ;;  %1252 = vmatpush1.bf16.msra.mxu1 %v4348_v10  ;;  %v4444_v20 = vcombine.low %v150_v12, %v198_v13  ;;  %v4353_v22 = vcombine.high %v56_v17, %v104_v19  ;;  %v199_v24 = vld [vmem:[#allocation5 + $0x490] sm:$0xff]  ;;  %v152_v25 = vld [vmem:[#allocation5 + $0x318] sm:$0xff]  ;;  %v4352_v29 = vcombine.low %v56_v17, %v104_v19  ;;  %v105_v33 = vld [vmem:[#allocation5 + $0x1a0] sm:$0xff] }
  0x3d   :  { %1212 = vmatprep.subr.bf16.mxu0 %v4443_v11  ;;  %1253 = vmatprep.subr.bf16.mxu1 %v4445_v14  ;;  %v200_v26 = vld [vmem:[#allocation5 + $0x498] sm:$0xff]  ;;  %v4447_v30 = vcombine.high %v151_v23, %v199_v24  ;;  %v58_v34 = vld [vmem:[#allocation5 + $0x28] sm:$0xff]  ;;  %v4446_v36 = vcombine.low %v151_v23, %v199_v24  ;;  %v4355_v38 = vcombine.high %v57_v32, %v105_v33  ;;  %v153_v40 = vld [vmem:[#allocation5 + $0x320] sm:$0xff]  ;;  %p4668_p13 = por %p4667_p12, %p4666_p11 }
  0x3e   :  { %v4755_v27 = vld [vmem:[#allocation2] sm:$0x1]  ;;  %v4449_v31 = vcombine.high %v152_v25, %v200_v26  ;;  %v106_v35 = vld [vmem:[#allocation5 + $0x1a8] sm:$0xff]  ;;  %v4448_v37 = vcombine.low %v152_v25, %v200_v26  ;;  %v201_v41 = vld [vmem:[#allocation5 + $0x4a0] sm:$0xff]  ;;  %v4354_v44 = vcombine.low %v57_v32, %v105_v33 }
  0x3f   :  { %v4357_v39 = vcombine.high %v58_v34, %v106_v35  ;;  %v154_v42 = vld [vmem:[#allocation5 + $0x328] sm:$0xff]  ;;  %v4356_v45 = vcombine.low %v58_v34, %v106_v35  ;;  %v4451_v46 = vcombine.high %v153_v40, %v201_v41  ;;  %v59_v48 = vld [vmem:[#allocation5 + $0x30] sm:$0xff]  ;;  %v60_v50 = vld [vmem:[#allocation5 + $0x38] sm:$0xff]  ;;  %v4450_v52 = vcombine.low %v153_v40, %v201_v41  ;;  %p4669_p0 = pnand %p4668_p13, %p4662_p10 }
  0x40   :  { %1213 = vmatpush1.bf16.msra.mxu0 %v4442_v18  ;;  %1254 = vmatpush1.bf16.msra.mxu1 %v4444_v20  ;;  %v202_v43 = vld [vmem:[#allocation5 + $0x4a8] sm:$0xff]  ;;  %v107_v49 = vld [vmem:[#allocation5 + $0x1b0] sm:$0xff]  ;;  %v108_v51 = vld [vmem:[#allocation5 + $0x1b8] sm:$0xff] }
  0x41   :  { %1292 = vmatprep.subr.bf16.mxu0 %v4351_v21  ;;  %1333 = vmatprep.subr.bf16.mxu1 %v4353_v22  ;;  %v4453_v47 = vcombine.high %v154_v42, %v202_v43  ;;  %v4452_v53 = vcombine.low %v154_v42, %v202_v43  ;;  %v4359_v54 = vcombine.high %v59_v48, %v107_v49  ;;  %v155_v56 = vld [vmem:[#allocation5 + $0x330] sm:$0xff]  ;;  %v156_v58 = vld [vmem:[#allocation5 + $0x338] sm:$0xff]  ;;  %v61_v1 = vld [vmem:[#allocation5 + $0x40] sm:$0xff] }
  0x42   :  { %v4361_v55 = vcombine.high %v60_v50, %v108_v51  ;;  %v203_v57 = vld [vmem:[#allocation5 + $0x4b0] sm:$0xff]  ;;  %v204_v59 = vld [vmem:[#allocation5 + $0x4b8] sm:$0xff]  ;;  %v4358_v60 = vcombine.low %v59_v48, %v107_v49  ;;  %v4360_v61 = vcombine.low %v60_v50, %v108_v51  ;;  %v109_v2 = vld [vmem:[#allocation5 + $0x1c0] sm:$0xff] }
  0x43   :  { %4538 = vmatmul.mubr.msk.bf16.vlgmr.msra.gmra.mrb[0].mxu0 %vm1206_vm0, %v4755_v27  ;;  %4539 = vmatmul.mubr.msk.bf16.vlgmr.msra.gmra.mrb[0].mxu1 %vm1206_vm0, %v4755_v27  ;;  %v4455_v62 = vcombine.high %v155_v56, %v203_v57  ;;  %v4457_v63 = vcombine.high %v156_v58, %v204_v59  ;;  %v62_v3 = vld [vmem:[#allocation5 + $0x48] sm:$0xff]  ;;  %v4454_v5 = vcombine.low %v155_v56, %v203_v57  ;;  %v157_v9 = vld [vmem:[#allocation5 + $0x340] sm:$0xff]  ;;  %v63_v17 = vld [vmem:[#allocation5 + $0x50] sm:$0xff] }
  0x44   :  { %1293 = vmatpush1.bf16.msra.mxu0 %v4350_v28  ;;  %1334 = vmatpush1.bf16.msra.mxu1 %v4352_v29  ;;  %v110_v4 = vld [vmem:[#allocation5 + $0x1c8] sm:$0xff]  ;;  %v4456_v6 = vcombine.low %v156_v58, %v204_v59  ;;  %v4363_v7 = vcombine.high %v61_v1, %v109_v2  ;;  %v205_v10 = vld [vmem:[#allocation5 + $0x4c0] sm:$0xff]  ;;  %v4362_v13 = vcombine.low %v61_v1, %v109_v2  ;;  %v111_v18 = vld [vmem:[#allocation5 + $0x1d0] sm:$0xff] }
  0x45   :  { %1294 = vmatprep.subr.bf16.mxu0 %v4447_v30  ;;  %1335 = vmatprep.subr.bf16.mxu1 %v4449_v31  ;;  %v4365_v8 = vcombine.high %v62_v3, %v110_v4  ;;  %v158_v11 = vld [vmem:[#allocation5 + $0x348] sm:$0xff]  ;;  %v4364_v14 = vcombine.low %v62_v3, %v110_v4  ;;  %v4459_v15 = vcombine.high %v157_v9, %v205_v10  ;;  %v64_v19 = vld [vmem:[#allocation5 + $0x58] sm:$0xff]  ;;  %v159_v25 = vld [vmem:[#allocation5 + $0x350] sm:$0xff] }
  0x46   :  { %1324 = vmatprep.mubr.bf16.mxu0 %v4694_v0  ;;  %1365 = vmatprep.mubr.bf16.mxu1 %v4694_v0  ;;  %v206_v12 = vld [vmem:[#allocation5 + $0x4c8] sm:$0xff]  ;;  %v112_v20 = vld [vmem:[#allocation5 + $0x1d8] sm:$0xff]  ;;  %v4458_v21 = vcombine.low %v157_v9, %v205_v10  ;;  %v4367_v23 = vcombine.high %v63_v17, %v111_v18  ;;  %v207_v26 = vld [vmem:[#allocation5 + $0x4d0] sm:$0xff]  ;;  %v4366_v30 = vcombine.low %v63_v17, %v111_v18 }
  0x47   :  { %v4461_v16 = vcombine.high %v158_v11, %v206_v12  ;;  %v4460_v22 = vcombine.low %v158_v11, %v206_v12  ;;  %v4369_v24 = vcombine.high %v64_v19, %v112_v20  ;;  %v160_v28 = vld [vmem:[#allocation5 + $0x358] sm:$0xff]  ;;  %v4368_v31 = vcombine.low %v64_v19, %v112_v20  ;;  %v65_v34 = vld [vmem:[#allocation5 + $0x60] sm:$0xff]  ;;  %v67_v50 = vld [vmem:[#allocation5 + $0x70] sm:$0xff] }
  0x48   :  { %1295 = vmatpush1.bf16.msra.mxu0 %v4446_v36  ;;  %1336 = vmatpush1.bf16.msra.mxu1 %v4448_v37  ;;  %v208_v29 = vld [vmem:[#allocation5 + $0x4d8] sm:$0xff]  ;;  %v4463_v32 = vcombine.high %v159_v25, %v207_v26  ;;  %v113_v35 = vld [vmem:[#allocation5 + $0x1e0] sm:$0xff]  ;;  %v66_v36 = vld [vmem:[#allocation5 + $0x68] sm:$0xff] }
  0x49   :  { %1374 = vmatprep.subr.bf16.mxu0 %v4355_v38  ;;  %1415 = vmatprep.subr.bf16.mxu1 %v4357_v39  ;;  %v4465_v33 = vcombine.high %v160_v28, %v208_v29  ;;  %v114_v37 = vld [vmem:[#allocation5 + $0x1e8] sm:$0xff]  ;;  %v4462_v38 = vcombine.low %v159_v25, %v207_v26  ;;  %v4464_v39 = vcombine.low %v160_v28, %v208_v29  ;;  %v161_v42 = vld [vmem:[#allocation5 + $0x360] sm:$0xff]  ;;  %v115_v51 = vld [vmem:[#allocation5 + $0x1f0] sm:$0xff] }
  0x4a   :  { %v4371_v40 = vcombine.high %v65_v34, %v113_v35  ;;  %v4373_v41 = vcombine.high %v66_v36, %v114_v37  ;;  %v209_v43 = vld [vmem:[#allocation5 + $0x4e0] sm:$0xff]  ;;  %v4375_v56 = vcombine.high %v67_v50, %v115_v51  ;;  %v163_v58 = vld [vmem:[#allocation5 + $0x370] sm:$0xff] }
  0x4b   :  { %4540 = vmatmul.mubr.msk.bf16.vlgmr.msra.gmra.mrb[4].mxu0 %vm1206_vm0, %v4755_v27  ;;  %4541 = vmatmul.mubr.msk.bf16.vlgmr.msra.gmra.mrb[4].mxu1 %vm1206_vm0, %v4755_v27  ;;  %v4467_v48 = vcombine.high %v161_v42, %v209_v43  ;;  %v211_v59 = vld [vmem:[#allocation5 + $0x4f0] sm:$0xff]  ;;  %v69_v3 = vld [vmem:[#allocation5 + $0x80] sm:$0xff] }
  0x4c   :  { %1375 = vmatpush1.bf16.msra.mxu0 %v4354_v44  ;;  %1416 = vmatpush1.bf16.msra.mxu1 %v4356_v45  ;;  %v162_v44 = vld [vmem:[#allocation5 + $0x368] sm:$0xff]  ;;  %v4471_v1 = vcombine.high %v163_v58, %v211_v59  ;;  %v117_v4 = vld [vmem:[#allocation5 + $0x200] sm:$0xff]  ;;  %v71_v19 = vld [vmem:[#allocation5 + $0x90] sm:$0xff] }
  0x4d   :  { %1376 = vmatprep.subr.bf16.mxu0 %v4451_v46  ;;  %1417 = vmatprep.subr.bf16.mxu1 %v4453_v47  ;;  %v210_v45 = vld [vmem:[#allocation5 + $0x4e8] sm:$0xff]  ;;  %v4370_v46 = vcombine.low %v65_v34, %v113_v35  ;;  %v4372_v47 = vcombine.low %v66_v36, %v114_v37  ;;  %v4379_v9 = vcombine.high %v69_v3, %v117_v4  ;;  %v165_v11 = vld [vmem:[#allocation5 + $0x380] sm:$0xff]  ;;  %v119_v20 = vld [vmem:[#allocation5 + $0x210] sm:$0xff] }
  0x4e   :  { %1406 = vmatprep.mubr.bf16.mxu0 %v4694_v0  ;;  %1447 = vmatprep.mubr.bf16.mxu1 %v4694_v0  ;;  %v4469_v49 = vcombine.high %v162_v44, %v210_v45  ;;  %v213_v12 = vld [vmem:[#allocation5 + $0x500] sm:$0xff]  ;;  %v4383_v25 = vcombine.high %v71_v19, %v119_v20  ;;  %v167_v28 = vld [vmem:[#allocation5 + $0x390] sm:$0xff] }
  0x4f   :  { %v4475_v17 = vcombine.high %v165_v11, %v213_v12  ;;  %v215_v29 = vld [vmem:[#allocation5 + $0x510] sm:$0xff]  ;;  %v73_v36 = vld [vmem:[#allocation5 + $0xa0] sm:$0xff] }
  0x50   :  { %1377 = vmatpush1.bf16.msra.mxu0 %v4450_v52  ;;  %1418 = vmatpush1.bf16.msra.mxu1 %v4452_v53  ;;  %v68_v52 = vld [vmem:[#allocation5 + $0x78] sm:$0xff]  ;;  %v4479_v34 = vcombine.high %v167_v28, %v215_v29  ;;  %v121_v37 = vld [vmem:[#allocation5 + $0x220] sm:$0xff] }
  0x51   :  { %1456 = vmatprep.subr.bf16.mxu0 %v4359_v54  ;;  %1497 = vmatprep.subr.bf16.mxu1 %v4361_v55  ;;  %v116_v53 = vld [vmem:[#allocation5 + $0x1f8] sm:$0xff]  ;;  %v4466_v54 = vcombine.low %v161_v42, %v209_v43  ;;  %v4468_v55 = vcombine.low %v162_v44, %v210_v45  ;;  %v4387_v42 = vcombine.high %v73_v36, %v121_v37  ;;  %v169_v44 = vld [vmem:[#allocation5 + $0x3a0] sm:$0xff] }
  0x52   :  { %v4377_v57 = vcombine.high %v68_v52, %v116_v53  ;;  %v217_v45 = vld [vmem:[#allocation5 + $0x520] sm:$0xff] }
  0x53   :  { %4542 = vmatmul.mubr.msk.bf16.vlgmr.msra.gmra.mrb[8].mxu0 %vm1206_vm0, %v4755_v27  ;;  %4543 = vmatmul.mubr.msk.bf16.vlgmr.msra.gmra.mrb[8].mxu1 %vm1206_vm0, %v4755_v27 }
  0x54   :  { %1457 = vmatpush1.bf16.msra.mxu0 %v4358_v60  ;;  %1498 = vmatpush1.bf16.msra.mxu1 %v4360_v61  ;;  %v164_v60 = vld [vmem:[#allocation5 + $0x378] sm:$0xff] }
  0x55   :  { %1458 = vmatprep.subr.bf16.mxu0 %v4455_v62  ;;  %1499 = vmatprep.subr.bf16.mxu1 %v4457_v63  ;;  %v212_v61 = vld [vmem:[#allocation5 + $0x4f8] sm:$0xff]  ;;  %v4374_v62 = vcombine.low %v67_v50, %v115_v51  ;;  %v4376_v63 = vcombine.low %v68_v52, %v116_v53  ;;  %v4483_v50 = vcombine.high %v169_v44, %v217_v45  ;;  %v75_v52 = vld [vmem:[#allocation5 + $0xb0] sm:$0xff] }
  0x56   :  { %1488 = vmatprep.mubr.bf16.mxu0 %v4694_v0  ;;  %1529 = vmatprep.mubr.bf16.mxu1 %v4694_v0  ;;  %v4473_v2 = vcombine.high %v164_v60, %v212_v61  ;;  %v123_v53 = vld [vmem:[#allocation5 + $0x230] sm:$0xff] }
  0x58   :  { %1459 = vmatpush1.bf16.msra.mxu0 %v4454_v5  ;;  %1500 = vmatpush1.bf16.msra.mxu1 %v4456_v6  ;;  %v70_v5 = vld [vmem:[#allocation5 + $0x88] sm:$0xff] }
  0x59   :  { %1538 = vmatprep.subr.bf16.mxu0 %v4363_v7  ;;  %1579 = vmatprep.subr.bf16.mxu1 %v4365_v8  ;;  %v118_v6 = vld [vmem:[#allocation5 + $0x208] sm:$0xff]  ;;  %v4470_v7 = vcombine.low %v163_v58, %v211_v59  ;;  %v4472_v8 = vcombine.low %v164_v60, %v212_v61  ;;  %v4391_v58 = vcombine.high %v75_v52, %v123_v53  ;;  %v171_v60 = vld [vmem:[#allocation5 + $0x3b0] sm:$0xff] }
  0x5a   :  { %v4381_v10 = vcombine.high %v70_v5, %v118_v6  ;;  %v219_v61 = vld [vmem:[#allocation5 + $0x530] sm:$0xff] }
  0x5b   :  { %4544 = vmatmul.mubr.msk.bf16.vlgmr.msra.gmra.mrb[12].mxu0 %vm1206_vm0, %v4755_v27  ;;  %4545 = vmatmul.mubr.msk.bf16.vlgmr.msra.gmra.mrb[12].mxu1 %vm1206_vm0, %v4755_v27 }
  0x5c   :  { %1539 = vmatpush1.bf16.msra.mxu0 %v4362_v13  ;;  %1580 = vmatpush1.bf16.msra.mxu1 %v4364_v14  ;;  %v166_v13 = vld [vmem:[#allocation5 + $0x388] sm:$0xff] }
  0x5d   :  { %1540 = vmatprep.subr.bf16.mxu0 %v4459_v15  ;;  %1581 = vmatprep.subr.bf16.mxu1 %v4461_v16  ;;  %v214_v14 = vld [vmem:[#allocation5 + $0x508] sm:$0xff]  ;;  %v4378_v15 = vcombine.low %v69_v3, %v117_v4  ;;  %v4380_v16 = vcombine.low %v70_v5, %v118_v6  ;;  %v4487_v3 = vcombine.high %v171_v60, %v219_v61  ;;  %v77_v5 = vld [vmem:[#allocation5 + $0xc0] sm:$0xff] }
  0x5e   :  { %1570 = vmatprep.mubr.bf16.mxu0 %v4694_v0  ;;  %1611 = vmatprep.mubr.bf16.mxu1 %v4694_v0  ;;  %v4477_v18 = vcombine.high %v166_v13, %v214_v14  ;;  %v125_v6 = vld [vmem:[#allocation5 + $0x240] sm:$0xff] }
  0x60   :  { %1541 = vmatpush1.bf16.msra.mxu0 %v4458_v21  ;;  %1582 = vmatpush1.bf16.msra.mxu1 %v4460_v22  ;;  %v72_v21 = vld [vmem:[#allocation5 + $0x98] sm:$0xff] }
  0x61   :  { %1620 = vmatprep.subr.bf16.mxu0 %v4367_v23  ;;  %1661 = vmatprep.subr.bf16.mxu1 %v4369_v24  ;;  %v120_v22 = vld [vmem:[#allocation5 + $0x218] sm:$0xff]  ;;  %v4474_v23 = vcombine.low %v165_v11, %v213_v12  ;;  %v4476_v24 = vcombine.low %v166_v13, %v214_v14  ;;  %v4395_v11 = vcombine.high %v77_v5, %v125_v6  ;;  %v173_v13 = vld [vmem:[#allocation5 + $0x3c0] sm:$0xff] }
  0x62   :  { %v4385_v26 = vcombine.high %v72_v21, %v120_v22  ;;  %v221_v14 = vld [vmem:[#allocation5 + $0x540] sm:$0xff] }
  0x63   :  { %4546 = vmatmul.mubr.msk.bf16.vlgmr.msra.gmra.mrb[16].mxu0 %vm1206_vm0, %v4755_v27  ;;  %4547 = vmatmul.mubr.msk.bf16.vlgmr.msra.gmra.mrb[16].mxu1 %vm1206_vm0, %v4755_v27 }
  0x64   :  { %1621 = vmatpush1.bf16.msra.mxu0 %v4366_v30  ;;  %1662 = vmatpush1.bf16.msra.mxu1 %v4368_v31  ;;  %v168_v30 = vld [vmem:[#allocation5 + $0x398] sm:$0xff] }
  0x65   :  { %1622 = vmatprep.subr.bf16.mxu0 %v4463_v32  ;;  %1663 = vmatprep.subr.bf16.mxu1 %v4465_v33  ;;  %v216_v31 = vld [vmem:[#allocation5 + $0x518] sm:$0xff]  ;;  %v4382_v32 = vcombine.low %v71_v19, %v119_v20  ;;  %v4384_v33 = vcombine.low %v72_v21, %v120_v22  ;;  %v4491_v19 = vcombine.high %v173_v13, %v221_v14  ;;  %v79_v21 = vld [vmem:[#allocation5 + $0xd0] sm:$0xff] }
  0x66   :  { %1652 = vmatprep.mubr.bf16.mxu0 %v4694_v0  ;;  %1693 = vmatprep.mubr.bf16.mxu1 %v4694_v0  ;;  %v4481_v35 = vcombine.high %v168_v30, %v216_v31  ;;  %v127_v22 = vld [vmem:[#allocation5 + $0x250] sm:$0xff] }
  0x68   :  { %1623 = vmatpush1.bf16.msra.mxu0 %v4462_v38  ;;  %1664 = vmatpush1.bf16.msra.mxu1 %v4464_v39  ;;  %v74_v38 = vld [vmem:[#allocation5 + $0xa8] sm:$0xff] }
  0x69   :  { %1702 = vmatprep.subr.bf16.mxu0 %v4371_v40  ;;  %1743 = vmatprep.subr.bf16.mxu1 %v4373_v41  ;;  %v122_v39 = vld [vmem:[#allocation5 + $0x228] sm:$0xff]  ;;  %v4478_v40 = vcombine.low %v167_v28, %v215_v29  ;;  %v4480_v41 = vcombine.low %v168_v30, %v216_v31  ;;  %v4399_v28 = vcombine.high %v79_v21, %v127_v22  ;;  %v175_v30 = vld [vmem:[#allocation5 + $0x3d0] sm:$0xff] }
  0x6a   :  { %v4389_v43 = vcombine.high %v74_v38, %v122_v39  ;;  %v223_v31 = vld [vmem:[#allocation5 + $0x550] sm:$0xff] }
  0x6b   :  { %4548 = vmatmul.mubr.msk.bf16.vlgmr.msra.gmra.mrb[20].mxu0 %vm1206_vm0, %v4755_v27  ;;  %4549 = vmatmul.mubr.msk.bf16.vlgmr.msra.gmra.mrb[20].mxu1 %vm1206_vm0, %v4755_v27 }
  0x6c   :  { %1703 = vmatpush1.bf16.msra.mxu0 %v4370_v46  ;;  %1744 = vmatpush1.bf16.msra.mxu1 %v4372_v47  ;;  %v170_v46 = vld [vmem:[#allocation5 + $0x3a8] sm:$0xff] }
  0x6d   :  { %1704 = vmatprep.subr.bf16.mxu0 %v4467_v48  ;;  %1745 = vmatprep.subr.bf16.mxu1 %v4469_v49  ;;  %v218_v47 = vld [vmem:[#allocation5 + $0x528] sm:$0xff]  ;;  %v4386_v48 = vcombine.low %v73_v36, %v121_v37  ;;  %v4388_v49 = vcombine.low %v74_v38, %v122_v39  ;;  %v4495_v36 = vcombine.high %v175_v30, %v223_v31  ;;  %v81_v38 = vld [vmem:[#allocation5 + $0xe0] sm:$0xff] }
  0x6e   :  { %1734 = vmatprep.mubr.bf16.mxu0 %v4694_v0  ;;  %1775 = vmatprep.mubr.bf16.mxu1 %v4694_v0  ;;  %v4485_v51 = vcombine.high %v170_v46, %v218_v47  ;;  %v129_v39 = vld [vmem:[#allocation5 + $0x260] sm:$0xff] }
  0x70   :  { %1705 = vmatpush1.bf16.msra.mxu0 %v4466_v54  ;;  %1746 = vmatpush1.bf16.msra.mxu1 %v4468_v55  ;;  %v76_v54 = vld [vmem:[#allocation5 + $0xb8] sm:$0xff] }
  0x71   :  { %1784 = vmatprep.subr.bf16.mxu0 %v4375_v56  ;;  %1825 = vmatprep.subr.bf16.mxu1 %v4377_v57  ;;  %v124_v55 = vld [vmem:[#allocation5 + $0x238] sm:$0xff]  ;;  %v4482_v56 = vcombine.low %v169_v44, %v217_v45  ;;  %v4484_v57 = vcombine.low %v170_v46, %v218_v47  ;;  %v4403_v44 = vcombine.high %v81_v38, %v129_v39  ;;  %v177_v46 = vld [vmem:[#allocation5 + $0x3e0] sm:$0xff] }
  0x72   :  { %v4393_v59 = vcombine.high %v76_v54, %v124_v55  ;;  %v225_v47 = vld [vmem:[#allocation5 + $0x560] sm:$0xff] }
  0x73   :  { %4550 = vmatmul.mubr.msk.bf16.vlgmr.msra.gmra.mrb[24].mxu0 %vm1206_vm0, %v4755_v27  ;;  %4551 = vmatmul.mubr.msk.bf16.vlgmr.msra.gmra.mrb[24].mxu1 %vm1206_vm0, %v4755_v27 }
  0x74   :  { %1785 = vmatpush1.bf16.msra.mxu0 %v4374_v62  ;;  %1826 = vmatpush1.bf16.msra.mxu1 %v4376_v63  ;;  %v172_v62 = vld [vmem:[#allocation5 + $0x3b8] sm:$0xff] }
  0x75   :  { %1786 = vmatprep.subr.bf16.mxu0 %v4471_v1  ;;  %1827 = vmatprep.subr.bf16.mxu1 %v4473_v2  ;;  %v220_v63 = vld [vmem:[#allocation5 + $0x538] sm:$0xff]  ;;  %v4390_v1 = vcombine.low %v75_v52, %v123_v53  ;;  %v4392_v2 = vcombine.low %v76_v54, %v124_v55  ;;  %v4499_v52 = vcombine.high %v177_v46, %v225_v47  ;;  %v83_v54 = vld [vmem:[#allocation5 + $0xf0] sm:$0xff] }
  0x76   :  { %1816 = vmatprep.mubr.bf16.mxu0 %v4694_v0  ;;  %1857 = vmatprep.mubr.bf16.mxu1 %v4694_v0  ;;  %v4489_v4 = vcombine.high %v172_v62, %v220_v63  ;;  %v131_v55 = vld [vmem:[#allocation5 + $0x270] sm:$0xff] }
  0x78   :  { %1787 = vmatpush1.bf16.msra.mxu0 %v4470_v7  ;;  %1828 = vmatpush1.bf16.msra.mxu1 %v4472_v8  ;;  %v78_v7 = vld [vmem:[#allocation5 + $0xc8] sm:$0xff] }
  0x79   :  { %1866 = vmatprep.subr.bf16.mxu0 %v4379_v9  ;;  %1907 = vmatprep.subr.bf16.mxu1 %v4381_v10  ;;  %v126_v8 = vld [vmem:[#allocation5 + $0x248] sm:$0xff]  ;;  %v4486_v9 = vcombine.low %v171_v60, %v219_v61  ;;  %v4488_v10 = vcombine.low %v172_v62, %v220_v63  ;;  %v4407_v60 = vcombine.high %v83_v54, %v131_v55  ;;  %v179_v62 = vld [vmem:[#allocation5 + $0x3f0] sm:$0xff] }
  0x7a   :  { %v4397_v12 = vcombine.high %v78_v7, %v126_v8  ;;  %v227_v63 = vld [vmem:[#allocation5 + $0x570] sm:$0xff] }
  0x7b   :  { %4552 = vmatmul.mubr.msk.bf16.vlgmr.msra.gmra.mrb[28].mxu0 %vm1206_vm0, %v4755_v27  ;;  %4553 = vmatmul.mubr.msk.bf16.vlgmr.msra.gmra.mrb[28].mxu1 %vm1206_vm0, %v4755_v27 }
  0x7c   :  { %1867 = vmatpush1.bf16.msra.mxu0 %v4378_v15  ;;  %1908 = vmatpush1.bf16.msra.mxu1 %v4380_v16  ;;  %v174_v15 = vld [vmem:[#allocation5 + $0x3c8] sm:$0xff] }
  0x7d   :  { %1868 = vmatprep.subr.bf16.mxu0 %v4475_v17  ;;  %1909 = vmatprep.subr.bf16.mxu1 %v4477_v18  ;;  %v222_v16 = vld [vmem:[#allocation5 + $0x548] sm:$0xff]  ;;  %v4394_v17 = vcombine.low %v77_v5, %v125_v6  ;;  %v4396_v18 = vcombine.low %v78_v7, %v126_v8  ;;  %v4503_v5 = vcombine.high %v179_v62, %v227_v63  ;;  %v85_v7 = vld [vmem:[#allocation5 + $0x100] sm:$0xff] }
  0x7e   :  { %1898 = vmatprep.mubr.bf16.mxu0 %v4694_v0  ;;  %1939 = vmatprep.mubr.bf16.mxu1 %v4694_v0  ;;  %v4493_v20 = vcombine.high %v174_v15, %v222_v16  ;;  %v133_v8 = vld [vmem:[#allocation5 + $0x280] sm:$0xff] }
  0x80   :  { %1869 = vmatpush1.bf16.msra.mxu0 %v4474_v23  ;;  %1910 = vmatpush1.bf16.msra.mxu1 %v4476_v24  ;;  %v80_v23 = vld [vmem:[#allocation5 + $0xd8] sm:$0xff] }
  0x81   :  { %1948 = vmatprep.subr.bf16.mxu0 %v4383_v25  ;;  %1989 = vmatprep.subr.bf16.mxu1 %v4385_v26  ;;  %v128_v24 = vld [vmem:[#allocation5 + $0x258] sm:$0xff]  ;;  %v4490_v25 = vcombine.low %v173_v13, %v221_v14  ;;  %v4492_v26 = vcombine.low %v174_v15, %v222_v16  ;;  %v4411_v13 = vcombine.high %v85_v7, %v133_v8  ;;  %v181_v15 = vld [vmem:[#allocation5 + $0x400] sm:$0xff] }
  0x82   :  { %v4401_v29 = vcombine.high %v80_v23, %v128_v24  ;;  %v229_v16 = vld [vmem:[#allocation5 + $0x580] sm:$0xff] }
  0x83   :  { %4554 = vmatmul.mubr.msk.bf16.vlgmr.msra.gmra.mrb[32].mxu0 %vm1206_vm0, %v4755_v27  ;;  %4555 = vmatmul.mubr.msk.bf16.vlgmr.msra.gmra.mrb[32].mxu1 %vm1206_vm0, %v4755_v27 }
  0x84   :  { %1949 = vmatpush1.bf16.msra.mxu0 %v4382_v32  ;;  %1990 = vmatpush1.bf16.msra.mxu1 %v4384_v33  ;;  %v176_v32 = vld [vmem:[#allocation5 + $0x3d8] sm:$0xff] }
  0x85   :  { %1950 = vmatprep.subr.bf16.mxu0 %v4479_v34  ;;  %1991 = vmatprep.subr.bf16.mxu1 %v4481_v35  ;;  %v224_v33 = vld [vmem:[#allocation5 + $0x558] sm:$0xff]  ;;  %v4398_v34 = vcombine.low %v79_v21, %v127_v22  ;;  %v4400_v35 = vcombine.low %v80_v23, %v128_v24  ;;  %v4507_v21 = vcombine.high %v181_v15, %v229_v16  ;;  %v87_v23 = vld [vmem:[#allocation5 + $0x110] sm:$0xff] }
  0x86   :  { %1980 = vmatprep.mubr.bf16.mxu0 %v4694_v0  ;;  %2021 = vmatprep.mubr.bf16.mxu1 %v4694_v0  ;;  %v4497_v37 = vcombine.high %v176_v32, %v224_v33  ;;  %v135_v24 = vld [vmem:[#allocation5 + $0x290] sm:$0xff] }
  0x88   :  { %1951 = vmatpush1.bf16.msra.mxu0 %v4478_v40  ;;  %1992 = vmatpush1.bf16.msra.mxu1 %v4480_v41  ;;  %v82_v40 = vld [vmem:[#allocation5 + $0xe8] sm:$0xff] }
  0x89   :  { %2030 = vmatprep.subr.bf16.mxu0 %v4387_v42  ;;  %2071 = vmatprep.subr.bf16.mxu1 %v4389_v43  ;;  %v130_v41 = vld [vmem:[#allocation5 + $0x268] sm:$0xff]  ;;  %v4494_v42 = vcombine.low %v175_v30, %v223_v31  ;;  %v4496_v43 = vcombine.low %v176_v32, %v224_v33  ;;  %v4415_v30 = vcombine.high %v87_v23, %v135_v24  ;;  %v183_v32 = vld [vmem:[#allocation5 + $0x410] sm:$0xff] }
  0x8a   :  { %v4405_v45 = vcombine.high %v82_v40, %v130_v41  ;;  %v231_v33 = vld [vmem:[#allocation5 + $0x590] sm:$0xff] }
  0x8b   :  { %4556 = vmatmul.mubr.msk.bf16.vlgmr.msra.gmra.mrb[36].mxu0 %vm1206_vm0, %v4755_v27  ;;  %4557 = vmatmul.mubr.msk.bf16.vlgmr.msra.gmra.mrb[36].mxu1 %vm1206_vm0, %v4755_v27 }
  0x8c   :  { %2031 = vmatpush1.bf16.msra.mxu0 %v4386_v48  ;;  %2072 = vmatpush1.bf16.msra.mxu1 %v4388_v49  ;;  %v178_v48 = vld [vmem:[#allocation5 + $0x3e8] sm:$0xff] }
  0x8d   :  { %2032 = vmatprep.subr.bf16.mxu0 %v4483_v50  ;;  %2073 = vmatprep.subr.bf16.mxu1 %v4485_v51  ;;  %v226_v49 = vld [vmem:[#allocation5 + $0x568] sm:$0xff]  ;;  %v4402_v50 = vcombine.low %v81_v38, %v129_v39  ;;  %v4404_v51 = vcombine.low %v82_v40, %v130_v41  ;;  %v4511_v38 = vcombine.high %v183_v32, %v231_v33  ;;  %v89_v40 = vld [vmem:[#allocation5 + $0x120] sm:$0xff] }
  0x8e   :  { %2062 = vmatprep.mubr.bf16.mxu0 %v4694_v0  ;;  %2103 = vmatprep.mubr.bf16.mxu1 %v4694_v0  ;;  %v4501_v53 = vcombine.high %v178_v48, %v226_v49  ;;  %v137_v41 = vld [vmem:[#allocation5 + $0x2a0] sm:$0xff] }
  0x90   :  { %2033 = vmatpush1.bf16.msra.mxu0 %v4482_v56  ;;  %2074 = vmatpush1.bf16.msra.mxu1 %v4484_v57  ;;  %v84_v56 = vld [vmem:[#allocation5 + $0xf8] sm:$0xff] }
  0x91   :  { %2112 = vmatprep.subr.bf16.mxu0 %v4391_v58  ;;  %2153 = vmatprep.subr.bf16.mxu1 %v4393_v59  ;;  %v132_v57 = vld [vmem:[#allocation5 + $0x278] sm:$0xff]  ;;  %v4498_v58 = vcombine.low %v177_v46, %v225_v47  ;;  %v4500_v59 = vcombine.low %v178_v48, %v226_v49  ;;  %v4419_v46 = vcombine.high %v89_v40, %v137_v41  ;;  %v185_v48 = vld [vmem:[#allocation5 + $0x420] sm:$0xff] }
  0x92   :  { %v4409_v61 = vcombine.high %v84_v56, %v132_v57  ;;  %v233_v49 = vld [vmem:[#allocation5 + $0x5a0] sm:$0xff] }
  0x93   :  { %4558 = vmatmul.mubr.msk.bf16.vlgmr.msra.gmra.mrb[40].mxu0 %vm1206_vm0, %v4755_v27  ;;  %4559 = vmatmul.mubr.msk.bf16.vlgmr.msra.gmra.mrb[40].mxu1 %vm1206_vm0, %v4755_v27 }
  0x94   :  { %2113 = vmatpush1.bf16.msra.mxu0 %v4390_v1  ;;  %2154 = vmatpush1.bf16.msra.mxu1 %v4392_v2  ;;  %v180_v1 = vld [vmem:[#allocation5 + $0x3f8] sm:$0xff] }
  0x95   :  { %2114 = vmatprep.subr.bf16.mxu0 %v4487_v3  ;;  %2155 = vmatprep.subr.bf16.mxu1 %v4489_v4  ;;  %v228_v2 = vld [vmem:[#allocation5 + $0x578] sm:$0xff]  ;;  %v4406_v3 = vcombine.low %v83_v54, %v131_v55  ;;  %v4408_v4 = vcombine.low %v84_v56, %v132_v57  ;;  %v4515_v54 = vcombine.high %v185_v48, %v233_v49  ;;  %v91_v56 = vld [vmem:[#allocation5 + $0x130] sm:$0xff] }
  0x96   :  { %2144 = vmatprep.mubr.bf16.mxu0 %v4694_v0  ;;  %2185 = vmatprep.mubr.bf16.mxu1 %v4694_v0  ;;  %v4505_v6 = vcombine.high %v180_v1, %v228_v2  ;;  %v139_v57 = vld [vmem:[#allocation5 + $0x2b0] sm:$0xff] }
  0x98   :  { %2115 = vmatpush1.bf16.msra.mxu0 %v4486_v9  ;;  %2156 = vmatpush1.bf16.msra.mxu1 %v4488_v10  ;;  %v86_v9 = vld [vmem:[#allocation5 + $0x108] sm:$0xff] }
  0x99   :  { %2194 = vmatprep.subr.bf16.mxu0 %v4395_v11  ;;  %2235 = vmatprep.subr.bf16.mxu1 %v4397_v12  ;;  %v134_v10 = vld [vmem:[#allocation5 + $0x288] sm:$0xff]  ;;  %v4502_v11 = vcombine.low %v179_v62, %v227_v63  ;;  %v4504_v12 = vcombine.low %v180_v1, %v228_v2  ;;  %v4423_v62 = vcombine.high %v91_v56, %v139_v57  ;;  %v187_v1 = vld [vmem:[#allocation5 + $0x430] sm:$0xff] }
  0x9a   :  { %v4413_v14 = vcombine.high %v86_v9, %v134_v10  ;;  %v235_v2 = vld [vmem:[#allocation5 + $0x5b0] sm:$0xff] }
  0x9b   :  { %4560 = vmatmul.mubr.msk.bf16.vlgmr.msra.gmra.mrb[44].mxu0 %vm1206_vm0, %v4755_v27  ;;  %4561 = vmatmul.mubr.msk.bf16.vlgmr.msra.gmra.mrb[44].mxu1 %vm1206_vm0, %v4755_v27 }
  0x9c   :  { %2195 = vmatpush1.bf16.msra.mxu0 %v4394_v17  ;;  %2236 = vmatpush1.bf16.msra.mxu1 %v4396_v18  ;;  %v182_v17 = vld [vmem:[#allocation5 + $0x408] sm:$0xff] }
  0x9d   :  { %2196 = vmatprep.subr.bf16.mxu0 %v4491_v19  ;;  %2237 = vmatprep.subr.bf16.mxu1 %v4493_v20  ;;  %v230_v18 = vld [vmem:[#allocation5 + $0x588] sm:$0xff]  ;;  %v4410_v19 = vcombine.low %v85_v7, %v133_v8  ;;  %v4412_v20 = vcombine.low %v86_v9, %v134_v10  ;;  %v93_v8 = vld [vmem:[#allocation5 + $0x140] sm:$0xff]  ;;  %v4865_v10 = vld [vmem:[#allocation2] sm:$0x1] }
  0x9e   :  { %2226 = vmatprep.mubr.bf16.mxu0 %v4694_v0  ;;  %2267 = vmatprep.mubr.bf16.mxu1 %v4694_v0  ;;  %v4509_v22 = vcombine.high %v182_v17, %v230_v18  ;;  %v141_v9 = vld [vmem:[#allocation5 + $0x2c0] sm:$0xff] }
  0xa0   :  { %2197 = vmatpush1.bf16.msra.mxu0 %v4490_v25  ;;  %2238 = vmatpush1.bf16.msra.mxu1 %v4492_v26  ;;  %v88_v25 = vld [vmem:[#allocation5 + $0x118] sm:$0xff] }
  0xa1   :  { %2276 = vmatprep.subr.bf16.mxu0 %v4399_v28  ;;  %2317 = vmatprep.subr.bf16.mxu1 %v4401_v29  ;;  %v136_v26 = vld [vmem:[#allocation5 + $0x298] sm:$0xff]  ;;  %v4506_v28 = vcombine.low %v181_v15, %v229_v16  ;;  %v4508_v29 = vcombine.low %v182_v17, %v230_v18  ;;  %v4427_v15 = vcombine.high %v93_v8, %v141_v9  ;;  %v189_v17 = vld [vmem:[#allocation5 + $0x440] sm:$0xff] }
  0xa2   :  { %v4417_v31 = vcombine.high %v88_v25, %v136_v26  ;;  %v237_v18 = vld [vmem:[#allocation5 + $0x5c0] sm:$0xff] }
  0xa3   :  { %4562 = vmatmul.mubr.msk.bf16.vlgmr.msra.gmra.mrb[48].mxu0 %vm1206_vm0, %v4755_v27  ;;  %4563 = vmatmul.mubr.msk.bf16.vlgmr.msra.gmra.mrb[48].mxu1 %vm1206_vm0, %v4755_v27 }
  0xa4   :  { %2277 = vmatpush1.bf16.msra.mxu0 %v4398_v34  ;;  %2318 = vmatpush1.bf16.msra.mxu1 %v4400_v35  ;;  %v184_v34 = vld [vmem:[#allocation5 + $0x418] sm:$0xff] }
  0xa5   :  { %2278 = vmatprep.subr.bf16.mxu0 %v4495_v36  ;;  %2319 = vmatprep.subr.bf16.mxu1 %v4497_v37  ;;  %v232_v35 = vld [vmem:[#allocation5 + $0x598] sm:$0xff]  ;;  %v4414_v36 = vcombine.low %v87_v23, %v135_v24  ;;  %v4416_v37 = vcombine.low %v88_v25, %v136_v26  ;;  %v4523_v23 = vcombine.high %v189_v17, %v237_v18  ;;  %v95_v25 = vld [vmem:[#allocation5 + $0x150] sm:$0xff] }
  0xa6   :  { %2308 = vmatprep.mubr.bf16.mxu0 %v4694_v0  ;;  %2349 = vmatprep.mubr.bf16.mxu1 %v4694_v0  ;;  %v4513_v39 = vcombine.high %v184_v34, %v232_v35  ;;  %v143_v26 = vld [vmem:[#allocation5 + $0x2d0] sm:$0xff] }
  0xa8   :  { %2279 = vmatpush1.bf16.msra.mxu0 %v4494_v42  ;;  %2320 = vmatpush1.bf16.msra.mxu1 %v4496_v43  ;;  %v90_v42 = vld [vmem:[#allocation5 + $0x128] sm:$0xff] }
  0xa9   :  { %2358 = vmatprep.subr.bf16.mxu0 %v4403_v44  ;;  %2399 = vmatprep.subr.bf16.mxu1 %v4405_v45  ;;  %v138_v43 = vld [vmem:[#allocation5 + $0x2a8] sm:$0xff]  ;;  %v4510_v44 = vcombine.low %v183_v32, %v231_v33  ;;  %v4512_v45 = vcombine.low %v184_v34, %v232_v35  ;;  %v4431_v32 = vcombine.high %v95_v25, %v143_v26  ;;  %v191_v34 = vld [vmem:[#allocation5 + $0x450] sm:$0xff] }
  0xaa   :  { %v4421_v47 = vcombine.high %v90_v42, %v138_v43  ;;  %v239_v35 = vld [vmem:[#allocation5 + $0x5d0] sm:$0xff] }
  0xab   :  { %4564 = vmatmul.mubr.msk.bf16.vlgmr.msra.gmra.mrb[52].mxu0 %vm1206_vm0, %v4755_v27  ;;  %4565 = vmatmul.mubr.msk.bf16.vlgmr.msra.gmra.mrb[52].mxu1 %vm1206_vm0, %v4755_v27 }
  0xac   :  { %2359 = vmatpush1.bf16.msra.mxu0 %v4402_v50  ;;  %2400 = vmatpush1.bf16.msra.mxu1 %v4404_v51  ;;  %v186_v50 = vld [vmem:[#allocation5 + $0x428] sm:$0xff] }
  0xad   :  { %2360 = vmatprep.subr.bf16.mxu0 %v4499_v52  ;;  %2401 = vmatprep.subr.bf16.mxu1 %v4501_v53  ;;  %v234_v51 = vld [vmem:[#allocation5 + $0x5a8] sm:$0xff]  ;;  %v4418_v52 = vcombine.low %v89_v40, %v137_v41  ;;  %v4420_v53 = vcombine.low %v90_v42, %v138_v43  ;;  %v4527_v40 = vcombine.high %v191_v34, %v239_v35  ;;  %v97_v42 = vld [vmem:[#allocation5 + $0x160] sm:$0xff] }
  0xae   :  { %2390 = vmatprep.mubr.bf16.mxu0 %v4694_v0  ;;  %2431 = vmatprep.mubr.bf16.mxu1 %v4694_v0  ;;  %v4517_v55 = vcombine.high %v186_v50, %v234_v51  ;;  %v145_v43 = vld [vmem:[#allocation5 + $0x2e0] sm:$0xff] }
  0xb0   :  { %2361 = vmatpush1.bf16.msra.mxu0 %v4498_v58  ;;  %2402 = vmatpush1.bf16.msra.mxu1 %v4500_v59  ;;  %v92_v58 = vld [vmem:[#allocation5 + $0x138] sm:$0xff] }
  0xb1   :  { %2440 = vmatprep.subr.bf16.mxu0 %v4407_v60  ;;  %2481 = vmatprep.subr.bf16.mxu1 %v4409_v61  ;;  %v140_v59 = vld [vmem:[#allocation5 + $0x2b8] sm:$0xff]  ;;  %v4514_v60 = vcombine.low %v185_v48, %v233_v49  ;;  %v4516_v61 = vcombine.low %v186_v50, %v234_v51  ;;  %v4435_v48 = vcombine.high %v97_v42, %v145_v43  ;;  %v193_v50 = vld [vmem:[#allocation5 + $0x460] sm:$0xff] }
  0xb2   :  { %v4425_v63 = vcombine.high %v92_v58, %v140_v59  ;;  %v241_v51 = vld [vmem:[#allocation5 + $0x5e0] sm:$0xff] }
  0xb3   :  { %4566 = vmatmul.mubr.msk.bf16.vlgmr.msra.gmra.mrb[56].mxu0 %vm1206_vm0, %v4755_v27  ;;  %4567 = vmatmul.mubr.msk.bf16.vlgmr.msra.gmra.mrb[56].mxu1 %vm1206_vm0, %v4755_v27 }
  0xb4   :  { %2441 = vmatpush1.bf16.msra.mxu0 %v4406_v3  ;;  %2482 = vmatpush1.bf16.msra.mxu1 %v4408_v4  ;;  %v188_v3 = vld [vmem:[#allocation5 + $0x438] sm:$0xff] }
  0xb5   :  { %2442 = vmatprep.subr.bf16.mxu0 %v4503_v5  ;;  %2483 = vmatprep.subr.bf16.mxu1 %v4505_v6  ;;  %v236_v4 = vld [vmem:[#allocation5 + $0x5b8] sm:$0xff]  ;;  %v4422_v5 = vcombine.low %v91_v56, %v139_v57  ;;  %v4519_v6 = vcombine.high %v187_v1, %v235_v2  ;;  %v4531_v56 = vcombine.high %v193_v50, %v241_v51 }
  0xb6   :  { %2472 = vmatprep.mubr.bf16.mxu0 %v4694_v0  ;;  %2513 = vmatprep.mubr.bf16.mxu1 %v4694_v0  ;;  %v4521_v7 = vcombine.high %v188_v3, %v236_v4 }
  0xb8   :  { %2443 = vmatpush1.bf16.msra.mxu0 %v4502_v11  ;;  %2484 = vmatpush1.bf16.msra.mxu1 %v4504_v12  ;;  %v94_v11 = vld [vmem:[#allocation5 + $0x148] sm:$0xff] }
  0xb9   :  { %2522 = vmatprep.subr.bf16.mxu0 %v4411_v13  ;;  %2563 = vmatprep.subr.bf16.mxu1 %v4413_v14  ;;  %v142_v12 = vld [vmem:[#allocation5 + $0x2c8] sm:$0xff]  ;;  %v4518_v13 = vcombine.low %v187_v1, %v235_v2  ;;  %v4520_v14 = vcombine.low %v188_v3, %v236_v4  ;;  %v195_v3 = vld [vmem:[#allocation5 + $0x470] sm:$0xff] }
  0xba   :  { %v4429_v16 = vcombine.high %v94_v11, %v142_v12  ;;  %v243_v4 = vld [vmem:[#allocation5 + $0x5f0] sm:$0xff] }
  0xbb   :  { %4568 = vmatmul.mubr.msk.bf16.vlgmr.msra.gmra.mrb[60].mxu0 %vm1206_vm0, %v4755_v27  ;;  %4569 = vmatmul.mubr.msk.bf16.vlgmr.msra.gmra.mrb[60].mxu1 %vm1206_vm0, %v4755_v27 }
  0xbc   :  { %2523 = vmatpush1.bf16.msra.mxu0 %v4410_v19  ;;  %2564 = vmatpush1.bf16.msra.mxu1 %v4412_v20  ;;  %v190_v19 = vld [vmem:[#allocation5 + $0x448] sm:$0xff] }
  0xbd   :  { %2524 = vmatprep.subr.bf16.mxu0 %v4507_v21  ;;  %2565 = vmatprep.subr.bf16.mxu1 %v4509_v22  ;;  %v238_v20 = vld [vmem:[#allocation5 + $0x5c8] sm:$0xff]  ;;  %v4426_v21 = vcombine.low %v93_v8, %v141_v9  ;;  %v4428_v22 = vcombine.low %v94_v11, %v142_v12  ;;  %v4535_v8 = vcombine.high %v195_v3, %v243_v4 }
  0xbe   :  { %2554 = vmatprep.mubr.bf16.mxu0 %v4694_v0  ;;  %2595 = vmatprep.mubr.bf16.mxu1 %v4694_v0  ;;  %v4525_v24 = vcombine.high %v190_v19, %v238_v20  ;;  %v4534_v11 = vcombine.low %v195_v3, %v243_v4 }
  0xc0   :  { %2525 = vmatpush1.bf16.msra.mxu0 %v4506_v28  ;;  %2566 = vmatpush1.bf16.msra.mxu1 %v4508_v29  ;;  %v96_v28 = vld [vmem:[#allocation5 + $0x158] sm:$0xff] }
  0xc1   :  { %2604 = vmatprep.subr.bf16.mxu0 %v4415_v30  ;;  %2645 = vmatprep.subr.bf16.mxu1 %v4417_v31  ;;  %v144_v29 = vld [vmem:[#allocation5 + $0x2d8] sm:$0xff]  ;;  %v4522_v30 = vcombine.low %v189_v17, %v237_v18  ;;  %v4524_v31 = vcombine.low %v190_v19, %v238_v20  ;;  %v3178_v18 = vld [vmem:[#allocation7] sm:$0xff] }
  0xc2   :  { %v4433_v33 = vcombine.high %v96_v28, %v144_v29 }
  0xc3   :  { %4570 = vmatmul.mubr.msk.bf16.vlgmr.msra.gmra.mrb[64].mxu0 %vm1206_vm0, %v4755_v27  ;;  %4571 = vmatmul.mubr.msk.bf16.vlgmr.msra.gmra.mrb[64].mxu1 %vm1206_vm0, %v4755_v27 }
  0xc4   :  { %2605 = vmatpush1.bf16.msra.mxu0 %v4414_v36  ;;  %2646 = vmatpush1.bf16.msra.mxu1 %v4416_v37  ;;  %v192_v36 = vld [vmem:[#allocation5 + $0x458] sm:$0xff] }
  0xc5   :  { %2606 = vmatprep.subr.bf16.mxu0 %v4511_v38  ;;  %2647 = vmatprep.subr.bf16.mxu1 %v4513_v39  ;;  %v240_v37 = vld [vmem:[#allocation5 + $0x5d8] sm:$0xff]  ;;  %v4430_v38 = vcombine.low %v95_v25, %v143_v26  ;;  %v4432_v39 = vcombine.low %v96_v28, %v144_v29 }
  0xc6   :  { %2636 = vmatprep.mubr.bf16.mxu0 %v4694_v0  ;;  %2677 = vmatprep.mubr.bf16.mxu1 %v4694_v0  ;;  %v4529_v41 = vcombine.high %v192_v36, %v240_v37 }
  0xc8   :  { %2607 = vmatpush1.bf16.msra.mxu0 %v4510_v44  ;;  %2648 = vmatpush1.bf16.msra.mxu1 %v4512_v45  ;;  %v98_v44 = vld [vmem:[#allocation5 + $0x168] sm:$0xff] }
  0xc9   :  { %2686 = vmatprep.subr.bf16.mxu0 %v4419_v46  ;;  %2727 = vmatprep.subr.bf16.mxu1 %v4421_v47  ;;  %v146_v45 = vld [vmem:[#allocation5 + $0x2e8] sm:$0xff]  ;;  %v4526_v46 = vcombine.low %v191_v34, %v239_v35  ;;  %v4528_v47 = vcombine.low %v192_v36, %v240_v37 }
  0xca   :  { %v4437_v49 = vcombine.high %v98_v44, %v146_v45 }
  0xcb   :  { %4572 = vmatmul.mubr.msk.bf16.vlgmr.msra.gmra.mrb[68].mxu0 %vm1206_vm0, %v4755_v27  ;;  %4573 = vmatmul.mubr.msk.bf16.vlgmr.msra.gmra.mrb[68].mxu1 %vm1206_vm0, %v4755_v27  ;;  %v4424_v27 = vcombine.low %v92_v58, %v140_v59  ;;  %v99_v58 = vld [vmem:[#allocation5 + $0x170] sm:$0xff] }
  0xcc   :  { %2687 = vmatpush1.bf16.msra.mxu0 %v4418_v52  ;;  %2728 = vmatpush1.bf16.msra.mxu1 %v4420_v53  ;;  %v194_v52 = vld [vmem:[#allocation5 + $0x468] sm:$0xff]  ;;  %v147_v59 = vld [vmem:[#allocation5 + $0x2f0] sm:$0xff] }
  0xcd   :  { %2688 = vmatprep.subr.bf16.mxu0 %v4515_v54  ;;  %2729 = vmatprep.subr.bf16.mxu1 %v4517_v55  ;;  %v242_v53 = vld [vmem:[#allocation5 + $0x5e8] sm:$0xff]  ;;  %v4434_v54 = vcombine.low %v97_v42, %v145_v43  ;;  %v4436_v55 = vcombine.low %v98_v44, %v146_v45  ;;  %v4439_v1 = vcombine.high %v99_v58, %v147_v59 }
  0xce   :  { %2718 = vmatprep.mubr.bf16.mxu0 %v4694_v0  ;;  %2759 = vmatprep.mubr.bf16.mxu1 %v4694_v0  ;;  %v4533_v57 = vcombine.high %v194_v52, %v242_v53 }
  0xd0   :  { %2689 = vmatpush1.bf16.msra.mxu0 %v4514_v60  ;;  %2730 = vmatpush1.bf16.msra.mxu1 %v4516_v61  ;;  %v100_v60 = vld [vmem:[#allocation5 + $0x178] sm:$0xff] }
  0xd1   :  { %2768 = vmatprep.subr.bf16.mxu0 %v4423_v62  ;;  %2809 = vmatprep.subr.bf16.mxu1 %v4425_v63  ;;  %v148_v61 = vld [vmem:[#allocation5 + $0x2f8] sm:$0xff]  ;;  %v4530_v62 = vcombine.low %v193_v50, %v241_v51  ;;  %v4532_v63 = vcombine.low %v194_v52, %v242_v53 }
  0xd2   :  { %v4441_v2 = vcombine.high %v100_v60, %v148_v61 }
  0xd3   :  { %4574 = vmatmul.mubr.msk.bf16.vlgmr.msra.gmra.mrb[72].mxu0 %vm1206_vm0, %v4865_v10  ;;  %4575 = vmatmul.mubr.msk.bf16.vlgmr.msra.gmra.mrb[72].mxu1 %vm1206_vm0, %v4865_v10 }
  0xd4   :  { %2769 = vmatpush1.bf16.msra.mxu0 %v4422_v5  ;;  %2810 = vmatpush1.bf16.msra.mxu1 %v4424_v27  ;;  %v196_v5 = vld [vmem:[#allocation5 + $0x478] sm:$0xff] }
  0xd5   :  { %2770 = vmatprep.subr.bf16.mxu0 %v4519_v6  ;;  %2811 = vmatprep.subr.bf16.mxu1 %v4521_v7  ;;  %v244_v27 = vld [vmem:[#allocation5 + $0x5f8] sm:$0xff]  ;;  %v4438_v6 = vcombine.low %v99_v58, %v147_v59  ;;  %v4440_v7 = vcombine.low %v100_v60, %v148_v61  ;;  %v3179_v60 = vld [vmem:[#allocation7 + $0x8] sm:$0xff] }
  0xd6   :  { %2800 = vmatprep.mubr.bf16.mxu0 %v4694_v0  ;;  %2841 = vmatprep.mubr.bf16.mxu1 %v4694_v0  ;;  %v4537_v9 = vcombine.high %v196_v5, %v244_v27  ;;  %v4536_v12 = vcombine.low %v196_v5, %v244_v27 }
  0xd8   :  { %2771 = vmatpush1.bf16.msra.mxu0 %v4518_v13  ;;  %2812 = vmatpush1.bf16.msra.mxu1 %v4520_v14  ;;  %v3202_v13 = vlaneseq }
  0xd9   :  { %2850 = vmatprep.subr.bf16.mxu0 %v4427_v15  ;;  %2891 = vmatprep.subr.bf16.mxu1 %v4429_v16  ;;  %v4695_v16 = vmov 1983009808  }
  0xda   :  { %v3203_v14 = vshrl.u32 %v3202_v13, 7  ;;  %v3877_v17 = vunpack.c.l.s4 %v4695_v16 }
  0xdb   :  { %4576 = vmatmul.mubr.msk.bf16.vlgmr.msra.gmra.mrb[76].mxu0 %vm1206_vm0, %v4865_v10  ;;  %4577 = vmatmul.mubr.msk.bf16.vlgmr.msra.gmra.mrb[76].mxu1 %vm1206_vm0, %v4865_v10 }
  0xdc   :  { %2851 = vmatpush1.bf16.msra.mxu0 %v4426_v21  ;;  %2892 = vmatpush1.bf16.msra.mxu1 %v4428_v22  ;;  %v4901_v15 = vsub.s32 0, %v3203_v14  ;;  %v4903_v19 = vsub.s32 2, %v3203_v14  ;;  %v4905_v20 = vsub.s32 1, %v3203_v14  ;;  %v3878_v22 = vunpack.c.0.s8 %v3877_v17 }
  0xdd   :  { %2852 = vmatprep.subr.bf16.mxu0 %v4523_v23  ;;  %2893 = vmatprep.subr.bf16.mxu1 %v4525_v24  ;;  %v4917_v36 = vsub.s32 6, %v3203_v14  ;;  %v4919_v37 = vsub.s32 5, %v3203_v14 }
  0xde   :  { %2882 = vmatprep.mubr.bf16.mxu0 %v4694_v0  ;;  %2923 = vmatprep.mubr.bf16.mxu1 %v4694_v0  ;;  %v3205_v21 = vrot.slane %v3178_v18, %v4901_v15  ;;  %v3213_v23 = vrot.slane %v3178_v18, %v4903_v19  ;;  %v3237_v4 = vrot.slane %v3179_v60, %v4901_v15 }
  0xdf   :  { %v3245_v27 = vrot.slane %v3179_v60, %v4903_v19 }
  0xe0   :  { %2853 = vmatpush1.bf16.msra.mxu0 %v4522_v30  ;;  %2894 = vmatpush1.bf16.msra.mxu1 %v4524_v31  ;;  %v4913_v30 = vsub.s32 %v3878_v22, %v3203_v14  ;;  %v4915_v31 = vsub.s32 4, %v3203_v14 }
  0xe1   :  { %2932 = vmatprep.subr.bf16.mxu0 %v4431_v32  ;;  %2973 = vmatprep.subr.bf16.mxu1 %v4433_v33 }
  0xe2   :  { %v3221_v45 = vrot.slane %v3178_v18, %v4915_v31 }
  0xe3   :  { %4578 = vmatmul.mubr.msk.bf16.vlgmr.msra.gmra.mrb[80].mxu0 %vm1206_vm0, %v4865_v10  ;;  %4579 = vmatmul.mubr.msk.bf16.vlgmr.msra.gmra.mrb[80].mxu1 %vm1206_vm0, %v4865_v10 }
  0xe4   :  { %2933 = vmatpush1.bf16.msra.mxu0 %v4430_v38  ;;  %2974 = vmatpush1.bf16.msra.mxu1 %v4432_v39 }
  0xe5   :  { %2934 = vmatprep.subr.bf16.mxu0 %v4527_v40  ;;  %2975 = vmatprep.subr.bf16.mxu1 %v4529_v41  ;;  %v4921_v41 = vsub.s32 7, %v3203_v14 }
  0xe6   :  { %2964 = vmatprep.mubr.bf16.mxu0 %v4694_v0  ;;  %3005 = vmatprep.mubr.bf16.mxu1 %v4694_v0 }
  0xe7   :  { %v3233_v50 = vrot.slane %v3178_v18, %v4921_v41 }
  0xe8   :  { %2935 = vmatpush1.bf16.msra.mxu0 %v4526_v46  ;;  %2976 = vmatpush1.bf16.msra.mxu1 %v4528_v47  ;;  %v3229_v47 = vrot.slane %v3178_v18, %v4917_v36 }
  0xe9   :  { %3014 = vmatprep.subr.bf16.mxu0 %v4435_v48  ;;  %3055 = vmatprep.subr.bf16.mxu1 %v4437_v49  ;;  %v3225_v48 = vrot.slane %v3178_v18, %v4919_v37 }
  0xeb   :  { %4580 = vmatmul.mubr.msk.bf16.vlgmr.msra.gmra.mrb[84].mxu0 %vm1206_vm0, %v4865_v10  ;;  %4581 = vmatmul.mubr.msk.bf16.vlgmr.msra.gmra.mrb[84].mxu1 %vm1206_vm0, %v4865_v10 }
  0xec   :  { %3015 = vmatpush1.bf16.msra.mxu0 %v4434_v54  ;;  %3056 = vmatpush1.bf16.msra.mxu1 %v4436_v55 }
  0xed   :  { %3016 = vmatprep.subr.bf16.mxu0 %v4531_v56  ;;  %3057 = vmatprep.subr.bf16.mxu1 %v4533_v57 }
  0xee   :  { %3046 = vmatprep.mubr.bf16.mxu0 %v4694_v0  ;;  %3087 = vmatprep.mubr.bf16.mxu1 %v4694_v0 }
  0xf0   :  { %3017 = vmatpush1.bf16.msra.mxu0 %v4530_v62  ;;  %3058 = vmatpush1.bf16.msra.mxu1 %v4532_v63 }
  0xf1   :  { %3096 = vmatprep.subr.bf16.mxu0 %v4439_v1  ;;  %3137 = vmatprep.subr.bf16.mxu1 %v4441_v2 }
  0xf3   :  { %4582 = vmatmul.mubr.msk.bf16.vlgmr.msra.gmra.mrb[88].mxu0 %vm1206_vm0, %v4865_v10  ;;  %4583 = vmatmul.mubr.msk.bf16.vlgmr.msra.gmra.mrb[88].mxu1 %vm1206_vm0, %v4865_v10 }
  0xf4   :  { %3097 = vmatpush1.bf16.msra.mxu0 %v4438_v6  ;;  %3138 = vmatpush1.bf16.msra.mxu1 %v4440_v7  ;;  %v3241_v6 = vrot.slane %v3179_v60, %v4905_v20 }
  0xf5   :  { %3098 = vmatprep.subr.bf16.mxu0 %v4535_v8  ;;  %3139 = vmatprep.subr.bf16.mxu1 %v4537_v9 }
  0xf6   :  { %3128 = vmatprep.mubr.bf16.mxu0 %v4694_v0  ;;  %3169 = vmatprep.mubr.bf16.mxu1 %v4694_v0  ;;  %v4907_v0 = vsub.s32 3, %v3203_v14 }
  0xf8   :  { %3099 = vmatpush1.bf16.msra.mxu0 %v4534_v11  ;;  %3140 = vmatpush1.bf16.msra.mxu1 %v4536_v12  ;;  %v3217_v24 = vrot.slane %v3178_v18, %v4907_v0  ;;  %v3249_v8 = vrot.slane %v3179_v60, %v4907_v0 }
  0xfb   :  { %4584 = vmatmul.mubr.msk.bf16.vlgmr.msra.gmra.mrb[92].mxu0 %vm1206_vm0, %v4865_v10  ;;  %4585 = vmatmul.mubr.msk.bf16.vlgmr.msra.gmra.mrb[92].mxu1 %vm1206_vm0, %v4865_v10  ;;  %v3209_v10 = vrot.slane %v3178_v18, %v4905_v20 }
 0x116   :  { %v1244_v25 = vpop.f32.mrb[0].mxu0  ;;  %v1285_v28 = vpop.f32.mrb[0].mxu1 }
 0x117   :  { %v3682_v26 = vadd.f32 %v3205_v21, %v1244_v25  ;;  %v1246_v29 = vpop.f32.mrb[1].mxu0  ;;  %v3684_v32 = vadd.f32 %v3213_v23, %v1285_v28  ;;  %v1287_v34 = vpop.f32.mrb[1].mxu1  ;;  %v3253_v28 = vrot.slane %v3179_v60, %v4915_v31 }
 0x118   :  { %v3683_v33 = vadd.f32 %v3209_v10, %v1246_v29  ;;  %v1248_v35 = vpop.f32.mrb[2].mxu0  ;;  %v3685_v38 = vadd.f32 %v3217_v24, %v1287_v34  ;;  %v1289_v39 = vpop.f32.mrb[2].mxu1 }
 0x119   :  { %v1249_v40 = vpop.f32.mrb[3].mxu0  ;;  %v1290_v43 = vpop.f32.mrb[3].mxu1  ;;  %v3265_v35 = vrot.slane %v3179_v60, %v4921_v41 }
 0x11a   :  { %v3874_v42 = vcombine.low %v3682_v26, %v3683_v33  ;;  %v3875_v44 = vcombine.low %v3684_v32, %v3685_v38  ;;  %v3261_v32 = vrot.slane %v3179_v60, %v4917_v36  ;;  %v3257_v33 = vrot.slane %v3179_v60, %v4919_v37 }
 0x11c   :  { %v3882_v46 = vrot.slane %v3874_v42, %v4913_v30  ;;  %v3889_v49 = vrot.slane %v3875_v44, %v4913_v30 }
 0x11e   :  { %v1326_v51 = vpop.f32.mrb[4].mxu0  ;;  %v3890_v52 = vcombine.low %v3882_v46, %v3889_v49  ;;  %v1367_v54 = vpop.f32.mrb[4].mxu1 }
 0x11f   :  { %v3686_v53 = vadd.f32 %v3221_v45, %v1326_v51  ;;  %v1328_v55 = vpop.f32.mrb[5].mxu0  ;;  %v3688_v56 = vadd.f32 %v3229_v47, %v1367_v54  ;;  %v1369_v58 = vpop.f32.mrb[5].mxu1 }
 0x120   :  { %v3687_v57 = vadd.f32 %v3225_v48, %v1328_v55  ;;  %v1330_v59 = vpop.f32.mrb[6].mxu0  ;;  %4306 = vst [vmem:[#allocation8] sm:$0xff] %v3890_v52  ;;  %v3689_v61 = vadd.f32 %v3233_v50, %v1369_v58  ;;  %v1371_v62 = vpop.f32.mrb[6].mxu1  ;;  %v3180_v48 = vld [vmem:[#allocation7 + $0x10] sm:$0xff] }
 0x121   :  { %v1331_v63 = vpop.f32.mrb[7].mxu0  ;;  %v1372_v2 = vpop.f32.mrb[7].mxu1  ;;  %v3269_v55 = vrot.slane %v3180_v48, %v4901_v15  ;;  %v3273_v58 = vrot.slane %v3180_v48, %v4905_v20  ;;  %v3281_v60 = vrot.slane %v3180_v48, %v4907_v0 }
 0x122   :  { %v3891_v1 = vcombine.low %v3686_v53, %v3687_v57  ;;  %v3892_v3 = vcombine.low %v3688_v56, %v3689_v61  ;;  %v3277_v57 = vrot.slane %v3180_v48, %v4903_v19 }
 0x124   :  { %v3899_v5 = vrot.slane %v3891_v1, %v4913_v30  ;;  %v3906_v7 = vrot.slane %v3892_v3, %v4913_v30 }
 0x126   :  { %v1408_v9 = vpop.f32.mrb[8].mxu0  ;;  %v3907_v11 = vcombine.low %v3899_v5, %v3906_v7  ;;  %v1449_v13 = vpop.f32.mrb[8].mxu1 }
 0x127   :  { %v3690_v12 = vadd.f32 %v3237_v4, %v1408_v9  ;;  %v1410_v14 = vpop.f32.mrb[9].mxu0  ;;  %v3692_v16 = vadd.f32 %v3245_v27, %v1449_v13  ;;  %v1451_v18 = vpop.f32.mrb[9].mxu1  ;;  %v3285_v13 = vrot.slane %v3180_v48, %v4915_v31 }
 0x128   :  { %v3691_v17 = vadd.f32 %v3241_v6, %v1410_v14  ;;  %v1412_v21 = vpop.f32.mrb[10].mxu0  ;;  %4307 = vst [vmem:[#allocation8 + $0x8] sm:$0xff] %v3907_v11  ;;  %v3693_v22 = vadd.f32 %v3249_v8, %v1451_v18  ;;  %v1453_v23 = vpop.f32.mrb[10].mxu1 }
 0x129   :  { %v1413_v10 = vpop.f32.mrb[11].mxu0  ;;  %v1454_v25 = vpop.f32.mrb[11].mxu1  ;;  %v3297_v21 = vrot.slane %v3180_v48, %v4921_v41 }
 0x12a   :  { %v3908_v24 = vcombine.low %v3690_v12, %v3691_v17  ;;  %v3909_v26 = vcombine.low %v3692_v16, %v3693_v22  ;;  %v3293_v16 = vrot.slane %v3180_v48, %v4917_v36  ;;  %v3289_v17 = vrot.slane %v3180_v48, %v4919_v37 }
 0x12c   :  { %v3916_v29 = vrot.slane %v3908_v24, %v4913_v30  ;;  %v3923_v34 = vrot.slane %v3909_v26, %v4913_v30 }
 0x12e   :  { %v1490_v38 = vpop.f32.mrb[12].mxu0  ;;  %v3924_v39 = vcombine.low %v3916_v29, %v3923_v34  ;;  %v1531_v42 = vpop.f32.mrb[12].mxu1 }
 0x12f   :  { %v3694_v40 = vadd.f32 %v3253_v28, %v1490_v38  ;;  %v1492_v43 = vpop.f32.mrb[13].mxu0  ;;  %v3696_v44 = vadd.f32 %v3261_v32, %v1531_v42  ;;  %v1533_v46 = vpop.f32.mrb[13].mxu1 }
 0x130   :  { %v3695_v45 = vadd.f32 %v3257_v33, %v1492_v43  ;;  %v1494_v47 = vpop.f32.mrb[14].mxu0  ;;  %4308 = vst [vmem:[#allocation8 + $0x10] sm:$0xff] %v3924_v39  ;;  %v3697_v49 = vadd.f32 %v3265_v35, %v1533_v46  ;;  %v1535_v50 = vpop.f32.mrb[14].mxu1  ;;  %v3181_v33 = vld [vmem:[#allocation7 + $0x18] sm:$0xff] }
 0x131   :  { %v1495_v51 = vpop.f32.mrb[15].mxu0  ;;  %v1536_v53 = vpop.f32.mrb[15].mxu1  ;;  %v3301_v43 = vrot.slane %v3181_v33, %v4901_v15  ;;  %v3305_v46 = vrot.slane %v3181_v33, %v4905_v20  ;;  %v3313_v48 = vrot.slane %v3181_v33, %v4907_v0 }
 0x132   :  { %v3925_v52 = vcombine.low %v3694_v40, %v3695_v45  ;;  %v3926_v54 = vcombine.low %v3696_v44, %v3697_v49  ;;  %v3309_v45 = vrot.slane %v3181_v33, %v4903_v19 }
 0x134   :  { %v3933_v56 = vrot.slane %v3925_v52, %v4913_v30  ;;  %v3940_v59 = vrot.slane %v3926_v54, %v4913_v30 }
 0x136   :  { %v1572_v61 = vpop.f32.mrb[16].mxu0  ;;  %v3941_v62 = vcombine.low %v3933_v56, %v3940_v59  ;;  %v1613_v1 = vpop.f32.mrb[16].mxu1 }
 0x137   :  { %v3698_v63 = vadd.f32 %v3269_v55, %v1572_v61  ;;  %v1574_v2 = vpop.f32.mrb[17].mxu0  ;;  %v3700_v3 = vadd.f32 %v3277_v57, %v1613_v1  ;;  %v1615_v5 = vpop.f32.mrb[17].mxu1  ;;  %v3317_v1 = vrot.slane %v3181_v33, %v4915_v31 }
 0x138   :  { %v3699_v4 = vadd.f32 %v3273_v58, %v1574_v2  ;;  %v1576_v27 = vpop.f32.mrb[18].mxu0  ;;  %4309 = vst [vmem:[#allocation8 + $0x18] sm:$0xff] %v3941_v62  ;;  %v3701_v6 = vadd.f32 %v3281_v60, %v1615_v5  ;;  %v1617_v7 = vpop.f32.mrb[18].mxu1 }
 0x139   :  { %v1577_v8 = vpop.f32.mrb[19].mxu0  ;;  %v1618_v11 = vpop.f32.mrb[19].mxu1  ;;  %v3329_v27 = vrot.slane %v3181_v33, %v4921_v41 }
 0x13a   :  { %v3942_v9 = vcombine.low %v3698_v63, %v3699_v4  ;;  %v3943_v12 = vcombine.low %v3700_v3, %v3701_v6  ;;  %v3325_v3 = vrot.slane %v3181_v33, %v4917_v36  ;;  %v3321_v4 = vrot.slane %v3181_v33, %v4919_v37 }
 0x13c   :  { %v3950_v14 = vrot.slane %v3942_v9, %v4913_v30  ;;  %v3957_v18 = vrot.slane %v3943_v12, %v4913_v30 }
 0x13e   :  { %v1654_v22 = vpop.f32.mrb[20].mxu0  ;;  %v3958_v23 = vcombine.low %v3950_v14, %v3957_v18  ;;  %v1695_v24 = vpop.f32.mrb[20].mxu1 }
 0x13f   :  { %v3702_v10 = vadd.f32 %v3285_v13, %v1654_v22  ;;  %v1656_v25 = vpop.f32.mrb[21].mxu0  ;;  %v3704_v26 = vadd.f32 %v3293_v16, %v1695_v24  ;;  %v1697_v29 = vpop.f32.mrb[21].mxu1 }
 0x140   :  { %v3703_v28 = vadd.f32 %v3289_v17, %v1656_v25  ;;  %v1658_v32 = vpop.f32.mrb[22].mxu0  ;;  %4310 = vst [vmem:[#allocation8 + $0x20] sm:$0xff] %v3958_v23  ;;  %v3705_v34 = vadd.f32 %v3297_v21, %v1697_v29  ;;  %v1699_v35 = vpop.f32.mrb[22].mxu1  ;;  %v3182_v17 = vld [vmem:[#allocation7 + $0x20] sm:$0xff] }
 0x141   :  { %v1659_v38 = vpop.f32.mrb[23].mxu0  ;;  %v1700_v40 = vpop.f32.mrb[23].mxu1  ;;  %v3333_v25 = vrot.slane %v3182_v17, %v4901_v15  ;;  %v3337_v29 = vrot.slane %v3182_v17, %v4905_v20  ;;  %v3345_v33 = vrot.slane %v3182_v17, %v4907_v0 }
 0x142   :  { %v3959_v39 = vcombine.low %v3702_v10, %v3703_v28  ;;  %v3960_v42 = vcombine.low %v3704_v26, %v3705_v34  ;;  %v3341_v28 = vrot.slane %v3182_v17, %v4903_v19 }
 0x144   :  { %v3967_v44 = vrot.slane %v3959_v39, %v4913_v30  ;;  %v3974_v47 = vrot.slane %v3960_v42, %v4913_v30 }
 0x146   :  { %v1736_v49 = vpop.f32.mrb[24].mxu0  ;;  %v3975_v50 = vcombine.low %v3967_v44, %v3974_v47  ;;  %v1777_v52 = vpop.f32.mrb[24].mxu1 }
 0x147   :  { %v3706_v51 = vadd.f32 %v3301_v43, %v1736_v49  ;;  %v1738_v53 = vpop.f32.mrb[25].mxu0  ;;  %v3708_v54 = vadd.f32 %v3309_v45, %v1777_v52  ;;  %v1779_v56 = vpop.f32.mrb[25].mxu1  ;;  %v3349_v52 = vrot.slane %v3182_v17, %v4915_v31 }
 0x148   :  { %v3707_v55 = vadd.f32 %v3305_v46, %v1738_v53  ;;  %v1740_v57 = vpop.f32.mrb[26].mxu0  ;;  %4311 = vst [vmem:[#allocation8 + $0x28] sm:$0xff] %v3975_v50  ;;  %v3709_v58 = vadd.f32 %v3313_v48, %v1779_v56  ;;  %v1781_v59 = vpop.f32.mrb[26].mxu1 }
 0x149   :  { %v1741_v60 = vpop.f32.mrb[27].mxu0  ;;  %v1782_v62 = vpop.f32.mrb[27].mxu1  ;;  %v3361_v57 = vrot.slane %v3182_v17, %v4921_v41 }
 0x14a   :  { %v3976_v61 = vcombine.low %v3706_v51, %v3707_v55  ;;  %v3977_v63 = vcombine.low %v3708_v54, %v3709_v58  ;;  %v3357_v54 = vrot.slane %v3182_v17, %v4917_v36  ;;  %v3353_v55 = vrot.slane %v3182_v17, %v4919_v37 }
 0x14c   :  { %v3984_v2 = vrot.slane %v3976_v61, %v4913_v30  ;;  %v3991_v5 = vrot.slane %v3977_v63, %v4913_v30 }
 0x14e   :  { %v1818_v6 = vpop.f32.mrb[28].mxu0  ;;  %v3992_v7 = vcombine.low %v3984_v2, %v3991_v5  ;;  %v1859_v9 = vpop.f32.mrb[28].mxu1 }
 0x14f   :  { %v3710_v8 = vadd.f32 %v3317_v1, %v1818_v6  ;;  %v1820_v11 = vpop.f32.mrb[29].mxu0  ;;  %v3712_v12 = vadd.f32 %v3325_v3, %v1859_v9  ;;  %v1861_v14 = vpop.f32.mrb[29].mxu1 }
 0x150   :  { %v3711_v13 = vadd.f32 %v3321_v4, %v1820_v11  ;;  %v1822_v16 = vpop.f32.mrb[30].mxu0  ;;  %4312 = vst [vmem:[#allocation8 + $0x30] sm:$0xff] %v3992_v7  ;;  %v3713_v18 = vadd.f32 %v3329_v27, %v1861_v14  ;;  %v1863_v21 = vpop.f32.mrb[30].mxu1  ;;  %v3183_v4 = vld [vmem:[#allocation7 + $0x28] sm:$0xff] }
 0x151   :  { %v1823_v22 = vpop.f32.mrb[31].mxu0  ;;  %v1864_v10 = vpop.f32.mrb[31].mxu1  ;;  %v3365_v11 = vrot.slane %v3183_v4, %v4901_v15  ;;  %v3369_v14 = vrot.slane %v3183_v4, %v4905_v20  ;;  %v3377_v17 = vrot.slane %v3183_v4, %v4907_v0 }
 0x152   :  { %v3993_v23 = vcombine.low %v3710_v8, %v3711_v13  ;;  %v3994_v24 = vcombine.low %v3712_v12, %v3713_v18  ;;  %v3373_v13 = vrot.slane %v3183_v4, %v4903_v19 }
 0x154   :  { %v4001_v26 = vrot.slane %v3993_v23, %v4913_v30  ;;  %v4008_v32 = vrot.slane %v3994_v24, %v4913_v30 }
 0x156   :  { %v1900_v34 = vpop.f32.mrb[32].mxu0  ;;  %v4009_v35 = vcombine.low %v4001_v26, %v4008_v32  ;;  %v1941_v39 = vpop.f32.mrb[32].mxu1 }
 0x157   :  { %v3714_v38 = vadd.f32 %v3333_v25, %v1900_v34  ;;  %v1902_v40 = vpop.f32.mrb[33].mxu0  ;;  %v3716_v42 = vadd.f32 %v3341_v28, %v1941_v39  ;;  %v1943_v44 = vpop.f32.mrb[33].mxu1  ;;  %v3381_v39 = vrot.slane %v3183_v4, %v4915_v31 }
 0x158   :  { %v3715_v43 = vadd.f32 %v3337_v29, %v1902_v40  ;;  %v1904_v45 = vpop.f32.mrb[34].mxu0  ;;  %4313 = vst [vmem:[#allocation8 + $0x38] sm:$0xff] %v4009_v35  ;;  %v3717_v46 = vadd.f32 %v3345_v33, %v1943_v44  ;;  %v1945_v47 = vpop.f32.mrb[34].mxu1 }
 0x159   :  { %v1905_v48 = vpop.f32.mrb[35].mxu0  ;;  %v1946_v50 = vpop.f32.mrb[35].mxu1  ;;  %v3393_v45 = vrot.slane %v3183_v4, %v4921_v41 }
 0x15a   :  { %v4010_v49 = vcombine.low %v3714_v38, %v3715_v43  ;;  %v4011_v51 = vcombine.low %v3716_v42, %v3717_v46  ;;  %v3389_v42 = vrot.slane %v3183_v4, %v4917_v36  ;;  %v3385_v43 = vrot.slane %v3183_v4, %v4919_v37 }
 0x15c   :  { %v4018_v53 = vrot.slane %v4010_v49, %v4913_v30  ;;  %v4025_v56 = vrot.slane %v4011_v51, %v4913_v30 }
 0x15e   :  { %v1982_v58 = vpop.f32.mrb[36].mxu0  ;;  %v4026_v59 = vcombine.low %v4018_v53, %v4025_v56  ;;  %v2023_v61 = vpop.f32.mrb[36].mxu1 }
 0x15f   :  { %v3718_v60 = vadd.f32 %v3349_v52, %v1982_v58  ;;  %v1984_v62 = vpop.f32.mrb[37].mxu0  ;;  %v3720_v63 = vadd.f32 %v3357_v54, %v2023_v61  ;;  %v2025_v2 = vpop.f32.mrb[37].mxu1 }
 0x160   :  { %v3719_v1 = vadd.f32 %v3353_v55, %v1984_v62  ;;  %v1986_v3 = vpop.f32.mrb[38].mxu0  ;;  %4314 = vst [vmem:[#allocation8 + $0x40] sm:$0xff] %v4026_v59  ;;  %v3721_v5 = vadd.f32 %v3361_v57, %v2025_v2  ;;  %v2027_v27 = vpop.f32.mrb[38].mxu1  ;;  %v3184_v55 = vld [vmem:[#allocation7 + $0x30] sm:$0xff] }
 0x161   :  { %v1987_v6 = vpop.f32.mrb[39].mxu0  ;;  %v2028_v8 = vpop.f32.mrb[39].mxu1  ;;  %v3397_v62 = vrot.slane %v3184_v55, %v4901_v15  ;;  %v3401_v2 = vrot.slane %v3184_v55, %v4905_v20  ;;  %v3409_v4 = vrot.slane %v3184_v55, %v4907_v0 }
 0x162   :  { %v4027_v7 = vcombine.low %v3718_v60, %v3719_v1  ;;  %v4028_v9 = vcombine.low %v3720_v63, %v3721_v5  ;;  %v3405_v1 = vrot.slane %v3184_v55, %v4903_v19 }
 0x164   :  { %v4035_v12 = vrot.slane %v4027_v7, %v4913_v30  ;;  %v4042_v16 = vrot.slane %v4028_v9, %v4913_v30 }
 0x166   :  { %v2064_v18 = vpop.f32.mrb[40].mxu0  ;;  %v4043_v21 = vcombine.low %v4035_v12, %v4042_v16  ;;  %v2105_v23 = vpop.f32.mrb[40].mxu1 }
 0x167   :  { %v3722_v22 = vadd.f32 %v3365_v11, %v2064_v18  ;;  %v2066_v10 = vpop.f32.mrb[41].mxu0  ;;  %v3724_v24 = vadd.f32 %v3373_v13, %v2105_v23  ;;  %v2107_v26 = vpop.f32.mrb[41].mxu1  ;;  %v3413_v23 = vrot.slane %v3184_v55, %v4915_v31 }
 0x168   :  { %v3723_v25 = vadd.f32 %v3369_v14, %v2066_v10  ;;  %v2068_v28 = vpop.f32.mrb[42].mxu0  ;;  %4315 = vst [vmem:[#allocation8 + $0x48] sm:$0xff] %v4043_v21  ;;  %v3725_v29 = vadd.f32 %v3377_v17, %v2107_v26  ;;  %v2109_v32 = vpop.f32.mrb[42].mxu1 }
 0x169   :  { %v2069_v33 = vpop.f32.mrb[43].mxu0  ;;  %v2110_v35 = vpop.f32.mrb[43].mxu1  ;;  %v3425_v28 = vrot.slane %v3184_v55, %v4921_v41 }
 0x16a   :  { %v4044_v34 = vcombine.low %v3722_v22, %v3723_v25  ;;  %v4045_v38 = vcombine.low %v3724_v24, %v3725_v29  ;;  %v3421_v24 = vrot.slane %v3184_v55, %v4917_v36  ;;  %v3417_v25 = vrot.slane %v3184_v55, %v4919_v37 }
 0x16c   :  { %v4052_v40 = vrot.slane %v4044_v34, %v4913_v30  ;;  %v4059_v44 = vrot.slane %v4045_v38, %v4913_v30 }
 0x16e   :  { %v2146_v46 = vpop.f32.mrb[44].mxu0  ;;  %v4060_v47 = vcombine.low %v4052_v40, %v4059_v44  ;;  %v2187_v49 = vpop.f32.mrb[44].mxu1 }
 0x16f   :  { %v3726_v48 = vadd.f32 %v3381_v39, %v2146_v46  ;;  %v2148_v50 = vpop.f32.mrb[45].mxu0  ;;  %v3728_v51 = vadd.f32 %v3389_v42, %v2187_v49  ;;  %v2189_v53 = vpop.f32.mrb[45].mxu1 }
 0x170   :  { %v3727_v52 = vadd.f32 %v3385_v43, %v2148_v50  ;;  %v2150_v54 = vpop.f32.mrb[46].mxu0  ;;  %4316 = vst [vmem:[#allocation8 + $0x50] sm:$0xff] %v4060_v47  ;;  %v3729_v56 = vadd.f32 %v3393_v45, %v2189_v53  ;;  %v2191_v57 = vpop.f32.mrb[46].mxu1  ;;  %v3185_v43 = vld [vmem:[#allocation7 + $0x38] sm:$0xff] }
 0x171   :  { %v2151_v58 = vpop.f32.mrb[47].mxu0  ;;  %v2192_v60 = vpop.f32.mrb[47].mxu1  ;;  %v3429_v50 = vrot.slane %v3185_v43, %v4901_v15  ;;  %v3433_v53 = vrot.slane %v3185_v43, %v4905_v20  ;;  %v3441_v55 = vrot.slane %v3185_v43, %v4907_v0 }
 0x172   :  { %v4061_v59 = vcombine.low %v3726_v48, %v3727_v52  ;;  %v4062_v61 = vcombine.low %v3728_v51, %v3729_v56  ;;  %v3437_v52 = vrot.slane %v3185_v43, %v4903_v19 }
 0x174   :  { %v4069_v63 = vrot.slane %v4061_v59, %v4913_v30  ;;  %v4076_v3 = vrot.slane %v4062_v61, %v4913_v30 }
 0x176   :  { %v2228_v5 = vpop.f32.mrb[48].mxu0  ;;  %v4077_v27 = vcombine.low %v4069_v63, %v4076_v3  ;;  %v2269_v7 = vpop.f32.mrb[48].mxu1 }
 0x177   :  { %v3730_v6 = vadd.f32 %v3397_v62, %v2228_v5  ;;  %v2230_v8 = vpop.f32.mrb[49].mxu0  ;;  %v3732_v9 = vadd.f32 %v3405_v1, %v2269_v7  ;;  %v2271_v12 = vpop.f32.mrb[49].mxu1  ;;  %v3445_v7 = vrot.slane %v3185_v43, %v4915_v31 }
 0x178   :  { %v3731_v11 = vadd.f32 %v3401_v2, %v2230_v8  ;;  %v2232_v13 = vpop.f32.mrb[50].mxu0  ;;  %4317 = vst [vmem:[#allocation8 + $0x58] sm:$0xff] %v4077_v27  ;;  %v3733_v14 = vadd.f32 %v3409_v4, %v2271_v12  ;;  %v2273_v16 = vpop.f32.mrb[50].mxu1 }
 0x179   :  { %v2233_v17 = vpop.f32.mrb[51].mxu0  ;;  %v2274_v21 = vpop.f32.mrb[51].mxu1  ;;  %v3457_v13 = vrot.slane %v3185_v43, %v4921_v41 }
 0x17a   :  { %v4078_v18 = vcombine.low %v3730_v6, %v3731_v11  ;;  %v4079_v22 = vcombine.low %v3732_v9, %v3733_v14  ;;  %v3453_v9 = vrot.slane %v3185_v43, %v4917_v36  ;;  %v3449_v11 = vrot.slane %v3185_v43, %v4919_v37 }
 0x17c   :  { %v4086_v10 = vrot.slane %v4078_v18, %v4913_v30  ;;  %v4093_v26 = vrot.slane %v4079_v22, %v4913_v30 }
 0x17e   :  { %v2310_v29 = vpop.f32.mrb[52].mxu0  ;;  %v4094_v32 = vcombine.low %v4086_v10, %v4093_v26  ;;  %v2351_v34 = vpop.f32.mrb[52].mxu1 }
 0x17f   :  { %v3734_v33 = vadd.f32 %v3413_v23, %v2310_v29  ;;  %v2312_v35 = vpop.f32.mrb[53].mxu0  ;;  %v3736_v38 = vadd.f32 %v3421_v24, %v2351_v34  ;;  %v2353_v40 = vpop.f32.mrb[53].mxu1 }
 0x180   :  { %v3735_v39 = vadd.f32 %v3417_v25, %v2312_v35  ;;  %v2314_v42 = vpop.f32.mrb[54].mxu0  ;;  %4318 = vst [vmem:[#allocation8 + $0x60] sm:$0xff] %v4094_v32  ;;  %v3737_v44 = vadd.f32 %v3425_v28, %v2353_v40  ;;  %v2355_v45 = vpop.f32.mrb[54].mxu1  ;;  %v3186_v25 = vld [vmem:[#allocation7 + $0x40] sm:$0xff] }
 0x181   :  { %v2315_v46 = vpop.f32.mrb[55].mxu0  ;;  %v2356_v48 = vpop.f32.mrb[55].mxu1  ;;  %v3461_v35 = vrot.slane %v3186_v25, %v4901_v15  ;;  %v3465_v40 = vrot.slane %v3186_v25, %v4905_v20  ;;  %v3473_v43 = vrot.slane %v3186_v25, %v4907_v0 }
 0x182   :  { %v4095_v47 = vcombine.low %v3734_v33, %v3735_v39  ;;  %v4096_v49 = vcombine.low %v3736_v38, %v3737_v44  ;;  %v3469_v39 = vrot.slane %v3186_v25, %v4903_v19 }
 0x184   :  { %v4103_v51 = vrot.slane %v4095_v47, %v4913_v30  ;;  %v4110_v54 = vrot.slane %v4096_v49, %v4913_v30 }
 0x186   :  { %v2392_v56 = vpop.f32.mrb[56].mxu0  ;;  %v4111_v57 = vcombine.low %v4103_v51, %v4110_v54  ;;  %v2433_v59 = vpop.f32.mrb[56].mxu1 }
 0x187   :  { %v3738_v58 = vadd.f32 %v3429_v50, %v2392_v56  ;;  %v2394_v60 = vpop.f32.mrb[57].mxu0  ;;  %v3740_v61 = vadd.f32 %v3437_v52, %v2433_v59  ;;  %v2435_v63 = vpop.f32.mrb[57].mxu1  ;;  %v3477_v59 = vrot.slane %v3186_v25, %v4915_v31 }
 0x188   :  { %v3739_v62 = vadd.f32 %v3433_v53, %v2394_v60  ;;  %v2396_v1 = vpop.f32.mrb[58].mxu0  ;;  %4319 = vst [vmem:[#allocation8 + $0x68] sm:$0xff] %v4111_v57  ;;  %v3741_v2 = vadd.f32 %v3441_v55, %v2435_v63  ;;  %v2437_v3 = vpop.f32.mrb[58].mxu1 }
 0x189   :  { %v2397_v4 = vpop.f32.mrb[59].mxu0  ;;  %v2438_v27 = vpop.f32.mrb[59].mxu1  ;;  %v3489_v1 = vrot.slane %v3186_v25, %v4921_v41 }
 0x18a   :  { %v4112_v5 = vcombine.low %v3738_v58, %v3739_v62  ;;  %v4113_v6 = vcombine.low %v3740_v61, %v3741_v2  ;;  %v3485_v61 = vrot.slane %v3186_v25, %v4917_v36  ;;  %v3481_v62 = vrot.slane %v3186_v25, %v4919_v37 }
 0x18c   :  { %v4120_v8 = vrot.slane %v4112_v5, %v4913_v30  ;;  %v4127_v12 = vrot.slane %v4113_v6, %v4913_v30 }
 0x18e   :  { %v2474_v14 = vpop.f32.mrb[60].mxu0  ;;  %v4128_v16 = vcombine.low %v4120_v8, %v4127_v12  ;;  %v2515_v18 = vpop.f32.mrb[60].mxu1 }
 0x18f   :  { %v3742_v17 = vadd.f32 %v3445_v7, %v2474_v14  ;;  %v2476_v21 = vpop.f32.mrb[61].mxu0  ;;  %v3744_v22 = vadd.f32 %v3453_v9, %v2515_v18  ;;  %v2517_v10 = vpop.f32.mrb[61].mxu1 }
 0x190   :  { %v3743_v23 = vadd.f32 %v3449_v11, %v2476_v21  ;;  %v2478_v24 = vpop.f32.mrb[62].mxu0  ;;  %4320 = vst [vmem:[#allocation8 + $0x70] sm:$0xff] %v4128_v16  ;;  %v3745_v26 = vadd.f32 %v3457_v13, %v2517_v10  ;;  %v2519_v28 = vpop.f32.mrb[62].mxu1  ;;  %v3187_v11 = vld [vmem:[#allocation7 + $0x48] sm:$0xff] }
 0x191   :  { %v2479_v29 = vpop.f32.mrb[63].mxu0  ;;  %v2520_v33 = vpop.f32.mrb[63].mxu1  ;;  %v3493_v21 = vrot.slane %v3187_v11, %v4901_v15  ;;  %v3497_v10 = vrot.slane %v3187_v11, %v4905_v20  ;;  %v3505_v25 = vrot.slane %v3187_v11, %v4907_v0 }
 0x192   :  { %v4129_v32 = vcombine.low %v3742_v17, %v3743_v23  ;;  %v4130_v34 = vcombine.low %v3744_v22, %v3745_v26  ;;  %v3501_v23 = vrot.slane %v3187_v11, %v4903_v19 }
 0x194   :  { %v4137_v38 = vrot.slane %v4129_v32, %v4913_v30  ;;  %v4144_v42 = vrot.slane %v4130_v34, %v4913_v30 }
 0x196   :  { %v2556_v44 = vpop.f32.mrb[64].mxu0  ;;  %v4145_v45 = vcombine.low %v4137_v38, %v4144_v42  ;;  %v2597_v47 = vpop.f32.mrb[64].mxu1 }
 0x197   :  { %v3746_v46 = vadd.f32 %v3461_v35, %v2556_v44  ;;  %v2558_v48 = vpop.f32.mrb[65].mxu0  ;;  %v3748_v49 = vadd.f32 %v3469_v39, %v2597_v47  ;;  %v2599_v51 = vpop.f32.mrb[65].mxu1  ;;  %v3509_v47 = vrot.slane %v3187_v11, %v4915_v31 }
 0x198   :  { %v3747_v50 = vadd.f32 %v3465_v40, %v2558_v48  ;;  %v2560_v52 = vpop.f32.mrb[66].mxu0  ;;  %4321 = vst [vmem:[#allocation8 + $0x78] sm:$0xff] %v4145_v45  ;;  %v3749_v53 = vadd.f32 %v3473_v43, %v2599_v51  ;;  %v2601_v54 = vpop.f32.mrb[66].mxu1 }
 0x199   :  { %v2561_v55 = vpop.f32.mrb[67].mxu0  ;;  %v2602_v57 = vpop.f32.mrb[67].mxu1  ;;  %v3521_v52 = vrot.slane %v3187_v11, %v4921_v41 }
 0x19a   :  { %v4146_v56 = vcombine.low %v3746_v46, %v3747_v50  ;;  %v4147_v58 = vcombine.low %v3748_v49, %v3749_v53  ;;  %v3517_v49 = vrot.slane %v3187_v11, %v4917_v36  ;;  %v3513_v50 = vrot.slane %v3187_v11, %v4919_v37 }
 0x19c   :  { %v4154_v60 = vrot.slane %v4146_v56, %v4913_v30  ;;  %v4161_v63 = vrot.slane %v4147_v58, %v4913_v30 }
 0x19e   :  { %v2638_v2 = vpop.f32.mrb[68].mxu0  ;;  %v4162_v3 = vcombine.low %v4154_v60, %v4161_v63  ;;  %v2679_v5 = vpop.f32.mrb[68].mxu1 }
 0x19f   :  { %v3750_v4 = vadd.f32 %v3477_v59, %v2638_v2  ;;  %v2640_v27 = vpop.f32.mrb[69].mxu0  ;;  %v3752_v6 = vadd.f32 %v3485_v61, %v2679_v5  ;;  %v2681_v8 = vpop.f32.mrb[69].mxu1 }
 0x1a0   :  { %v3751_v7 = vadd.f32 %v3481_v62, %v2640_v27  ;;  %v2642_v9 = vpop.f32.mrb[70].mxu0  ;;  %4322 = vst [vmem:[#allocation8 + $0x80] sm:$0xff] %v4162_v3  ;;  %v3753_v12 = vadd.f32 %v3489_v1, %v2681_v8  ;;  %v2683_v13 = vpop.f32.mrb[70].mxu1  ;;  %v3188_v62 = vld [vmem:[#allocation7 + $0x50] sm:$0xff] }
 0x1a1   :  { %v2643_v14 = vpop.f32.mrb[71].mxu0  ;;  %v2684_v17 = vpop.f32.mrb[71].mxu1  ;;  %v3525_v27 = vrot.slane %v3188_v62, %v4901_v15  ;;  %v3529_v8 = vrot.slane %v3188_v62, %v4905_v20  ;;  %v3537_v11 = vrot.slane %v3188_v62, %v4907_v0 }
 0x1a2   :  { %v4163_v16 = vcombine.low %v3750_v4, %v3751_v7  ;;  %v4164_v18 = vcombine.low %v3752_v6, %v3753_v12  ;;  %v3533_v7 = vrot.slane %v3188_v62, %v4903_v19 }
 0x1a4   :  { %v4171_v22 = vrot.slane %v4163_v16, %v4913_v30  ;;  %v4178_v24 = vrot.slane %v4164_v18, %v4913_v30 }
 0x1a6   :  { %v2720_v26 = vpop.f32.mrb[72].mxu0  ;;  %v4179_v28 = vcombine.low %v4171_v22, %v4178_v24  ;;  %v2761_v32 = vpop.f32.mrb[72].mxu1 }
 0x1a7   :  { %v3754_v29 = vadd.f32 %v3493_v21, %v2720_v26  ;;  %v2722_v33 = vpop.f32.mrb[73].mxu0  ;;  %v3756_v34 = vadd.f32 %v3501_v23, %v2761_v32  ;;  %v2763_v38 = vpop.f32.mrb[73].mxu1  ;;  %v3541_v32 = vrot.slane %v3188_v62, %v4915_v31 }
 0x1a8   :  { %v3755_v35 = vadd.f32 %v3497_v10, %v2722_v33  ;;  %v2724_v39 = vpop.f32.mrb[74].mxu0  ;;  %4323 = vst [vmem:[#allocation8 + $0x88] sm:$0xff] %v4179_v28  ;;  %v3757_v40 = vadd.f32 %v3505_v25, %v2763_v38  ;;  %v2765_v42 = vpop.f32.mrb[74].mxu1 }
 0x1a9   :  { %v2725_v43 = vpop.f32.mrb[75].mxu0  ;;  %v2766_v45 = vpop.f32.mrb[75].mxu1  ;;  %v3553_v39 = vrot.slane %v3188_v62, %v4921_v41 }
 0x1aa   :  { %v4180_v44 = vcombine.low %v3754_v29, %v3755_v35  ;;  %v4181_v46 = vcombine.low %v3756_v34, %v3757_v40  ;;  %v3549_v34 = vrot.slane %v3188_v62, %v4917_v36  ;;  %v3545_v35 = vrot.slane %v3188_v62, %v4919_v37 }
 0x1ac   :  { %v4188_v48 = vrot.slane %v4180_v44, %v4913_v30  ;;  %v4195_v51 = vrot.slane %v4181_v46, %v4913_v30 }
 0x1ae   :  { %v2802_v53 = vpop.f32.mrb[76].mxu0  ;;  %v4196_v54 = vcombine.low %v4188_v48, %v4195_v51  ;;  %v2843_v56 = vpop.f32.mrb[76].mxu1 }
 0x1af   :  { %v3758_v55 = vadd.f32 %v3509_v47, %v2802_v53  ;;  %v2804_v57 = vpop.f32.mrb[77].mxu0  ;;  %v3760_v58 = vadd.f32 %v3517_v49, %v2843_v56  ;;  %v2845_v60 = vpop.f32.mrb[77].mxu1 }
 0x1b0   :  { %v3759_v59 = vadd.f32 %v3513_v50, %v2804_v57  ;;  %v2806_v61 = vpop.f32.mrb[78].mxu0  ;;  %4324 = vst [vmem:[#allocation8 + $0x90] sm:$0xff] %v4196_v54  ;;  %v3761_v63 = vadd.f32 %v3521_v52, %v2845_v60  ;;  %v2847_v1 = vpop.f32.mrb[78].mxu1  ;;  %v3189_v50 = vld [vmem:[#allocation7 + $0x58] sm:$0xff] }
 0x1b1   :  { %v2807_v2 = vpop.f32.mrb[79].mxu0  ;;  %v2848_v4 = vpop.f32.mrb[79].mxu1  ;;  %v3557_v57 = vrot.slane %v3189_v50, %v4901_v15  ;;  %v3561_v60 = vrot.slane %v3189_v50, %v4905_v20  ;;  %v3569_v62 = vrot.slane %v3189_v50, %v4907_v0 }
 0x1b2   :  { %v4197_v3 = vcombine.low %v3758_v55, %v3759_v59  ;;  %v4198_v5 = vcombine.low %v3760_v58, %v3761_v63  ;;  %v3565_v59 = vrot.slane %v3189_v50, %v4903_v19 }
 0x1b4   :  { %v4205_v6 = vrot.slane %v4197_v3, %v4913_v30  ;;  %v4212_v9 = vrot.slane %v4198_v5, %v4913_v30 }
 0x1b6   :  { %v2884_v12 = vpop.f32.mrb[80].mxu0  ;;  %v4213_v13 = vcombine.low %v4205_v6, %v4212_v9  ;;  %v2925_v16 = vpop.f32.mrb[80].mxu1 }
 0x1b7   :  { %v3762_v14 = vadd.f32 %v3525_v27, %v2884_v12  ;;  %v2886_v17 = vpop.f32.mrb[81].mxu0  ;;  %v3764_v18 = vadd.f32 %v3533_v7, %v2925_v16  ;;  %v2927_v22 = vpop.f32.mrb[81].mxu1  ;;  %v3573_v12 = vrot.slane %v3189_v50, %v4915_v31 }
 0x1b8   :  { %v3763_v21 = vadd.f32 %v3529_v8, %v2886_v17  ;;  %v2888_v23 = vpop.f32.mrb[82].mxu0  ;;  %4325 = vst [vmem:[#allocation8 + $0x98] sm:$0xff] %v4213_v13  ;;  %v3765_v10 = vadd.f32 %v3537_v11, %v2927_v22  ;;  %v2929_v24 = vpop.f32.mrb[82].mxu1  ;;  %v3581_v13 = vrot.slane %v3189_v50, %v4917_v36  ;;  %v3585_v17 = vrot.slane %v3189_v50, %v4921_v41 }
 0x1b9   :  { %v2889_v25 = vpop.f32.mrb[83].mxu0  ;;  %v2930_v28 = vpop.f32.mrb[83].mxu1 }
 0x1ba   :  { %v4214_v26 = vcombine.low %v3762_v14, %v3763_v21  ;;  %v4215_v29 = vcombine.low %v3764_v18, %v3765_v10  ;;  %v3577_v14 = vrot.slane %v3189_v50, %v4919_v37 }
 0x1bc   :  { %v4222_v33 = vrot.slane %v4214_v26, %v4913_v30  ;;  %v4229_v38 = vrot.slane %v4215_v29, %v4913_v30 }
 0x1be   :  { %v2966_v40 = vpop.f32.mrb[84].mxu0  ;;  %v4230_v42 = vcombine.low %v4222_v33, %v4229_v38  ;;  %v3007_v44 = vpop.f32.mrb[84].mxu1 }
 0x1bf   :  { %v3766_v43 = vadd.f32 %v3541_v32, %v2966_v40  ;;  %v2968_v45 = vpop.f32.mrb[85].mxu0  ;;  %v3768_v46 = vadd.f32 %v3549_v34, %v3007_v44  ;;  %v3009_v48 = vpop.f32.mrb[85].mxu1 }
 0x1c0   :  { %v3767_v47 = vadd.f32 %v3545_v35, %v2968_v45  ;;  %v2970_v49 = vpop.f32.mrb[86].mxu0  ;;  %4326 = vst [vmem:[#allocation8 + $0xa0] sm:$0xff] %v4230_v42  ;;  %v3769_v51 = vadd.f32 %v3553_v39, %v3009_v48  ;;  %v3011_v52 = vpop.f32.mrb[86].mxu1 }
 0x1c1   :  { %v2971_v53 = vpop.f32.mrb[87].mxu0  ;;  %v3012_v55 = vpop.f32.mrb[87].mxu1 }
 0x1c2   :  { %v4231_v54 = vcombine.low %v3766_v43, %v3767_v47  ;;  %v4232_v56 = vcombine.low %v3768_v46, %v3769_v51 }
 0x1c4   :  { %v4239_v58 = vrot.slane %v4231_v54, %v4913_v30  ;;  %v4246_v61 = vrot.slane %v4232_v56, %v4913_v30 }
 0x1c6   :  { %v3048_v63 = vpop.f32.mrb[88].mxu0  ;;  %v4247_v1 = vcombine.low %v4239_v58, %v4246_v61  ;;  %v3089_v3 = vpop.f32.mrb[88].mxu1 }
 0x1c7   :  { %v3770_v2 = vadd.f32 %v3557_v57, %v3048_v63  ;;  %v3050_v4 = vpop.f32.mrb[89].mxu0  ;;  %v3772_v5 = vadd.f32 %v3565_v59, %v3089_v3  ;;  %v3091_v6 = vpop.f32.mrb[89].mxu1 }
 0x1c8   :  { %v3771_v27 = vadd.f32 %v3561_v60, %v3050_v4  ;;  %v3052_v7 = vpop.f32.mrb[90].mxu0  ;;  %4327 = vst [vmem:[#allocation8 + $0xa8] sm:$0xff] %v4247_v1  ;;  %v3773_v15 = vadd.f32 %v3569_v62, %v3091_v6  ;;  %v3093_v8 = vpop.f32.mrb[90].mxu1 }
 0x1c9   :  { %v3053_v9 = vpop.f32.mrb[91].mxu0  ;;  %v3094_v11 = vpop.f32.mrb[91].mxu1 }
 0x1ca   :  { %v4248_v19 = vcombine.low %v3770_v2, %v3771_v27  ;;  %v4249_v20 = vcombine.low %v3772_v5, %v3773_v15 }
 0x1cc   :  { %v4256_v0 = vrot.slane %v4248_v19, %v4913_v30  ;;  %v4263_v16 = vrot.slane %v4249_v20, %v4913_v30 }
 0x1ce   :  { %v3130_v18 = vpop.f32.mrb[92].mxu0  ;;  %v4264_v21 = vcombine.low %v4256_v0, %v4263_v16  ;;  %v3171_v23 = vpop.f32.mrb[92].mxu1 }
 0x1cf   :  { %v3774_v22 = vadd.f32 %v3573_v12, %v3130_v18  ;;  %v3132_v10 = vpop.f32.mrb[93].mxu0  ;;  %v3776_v24 = vadd.f32 %v3581_v13, %v3171_v23  ;;  %v3173_v26 = vpop.f32.mrb[93].mxu1 }
 0x1d0   :  { %v3775_v25 = vadd.f32 %v3577_v14, %v3132_v10  ;;  %v3134_v28 = vpop.f32.mrb[94].mxu0  ;;  %4328 = vst [vmem:[#allocation8 + $0xb0] sm:$0xff] %v4264_v21  ;;  %v3777_v31 = vadd.f32 %v3585_v17, %v3173_v26  ;;  %v3175_v29 = vpop.f32.mrb[94].mxu1 }
 0x1d1   :  { %v3135_v32 = vpop.f32.mrb[95].mxu0  ;;  %v3176_v33 = vpop.f32.mrb[95].mxu1 }
 0x1d2   :  { %v4265_v36 = vcombine.low %v3774_v22, %v3775_v25  ;;  %v4266_v37 = vcombine.low %v3776_v24, %v3777_v31 }
 0x1d4   :  { %v4273_v34 = vrot.slane %v4265_v36, %v4913_v30  ;;  %v4280_v41 = vrot.slane %v4266_v37, %v4913_v30 }
 0x1d6   :  { %v4281_v35 = vcombine.low %v4273_v34, %v4280_v41 }
 0x1d8   :  { %4329 = vst [vmem:[#allocation8 + $0xb8] sm:$0xff] %v4281_v35 }
 0x1d9   :  { %4672 = shalt.err (!%p4669_p0)
}
 0x1da   :  { %s4673_s26 = scalar_lea.hbm %s5078_s3, 3072 }
 0x1db   :  { %p4674_p1 = scmp.ne.s32.totalorder %s5078_s3, %s4673_s26  ;;  %p4677_p2 = scmp.lt.u32.totalorder %s4673_s26, %s5078_s3 }
 0x1dd   :  { %p4679_p3 = pnand %p4677_p2, %p4674_p1 }
 0x1df   :  { %4682 = shalt.err (!%p4679_p3)
}
 0x1e0   :  { %4339 = dma.vmem_to_hbm [thread:$0]  %s4337_s22, 3072, %s5078_s3, [#allocation4]  }
 0x1e1   :  { %4687 = dma.done.wait [#allocation4], 3072  }
 0x1e2   :  { %4688 = vsyncadd [#allocation4], 4294964224 }
 0x1e3   :  { %4343 = vsyncpa [#allocation3], 1 }
 0x1e4   :  { %4344 = vsyncpa [#allocation6], 1 }
 0x1e5   :  { %4345 = vsyncpa [#allocation4], 1 }

</bundles_post_ra>
